<compile_context>
chip_gen: v7x
topology: tpu7x:2x2x1
jax: 0.10.0
libtpu: 0.0.40
codegen_flags: <defaults>
</compile_context>

<pallas_src>
import numpy as np
import jax
import jax.numpy as jnp
from jax import lax
from jax.experimental import pallas as pl
from jax.experimental.pallas import tpu as pltpu

_SUBLANE = 8  # f32 sublane granularity


def _rma_kernel(x_ref, ewx_ref, ewh_ref, eb_ref,
                dwx_ref, dwh_ref, db_ref, ow_ref, ob_ref,
                out_ref, z_ref,
                xg_ref, hdec_ref):
    # All refs 2-D, time-major, batch padded to Bp (multiple of 8):
    #   x_ref   : (S*Bp, E)     row block t = rows [t*Bp, (t+1)*Bp)
    #   ewx_ref : (E, 4L)  ewh_ref: (L, 4L)  eb_ref: (1, 4L)   gates i,f,g,o
    #   dwx_ref : (L, 4E)  dwh_ref: (E, 4E)  db_ref: (1, 4E)
    #   ow_ref  : (E, E)   ob_ref : (1, E)
    #   out_ref : (M*Bp, E)     z_ref: (Bp, L)
    #   xg_ref  : VMEM scratch (S*Bp, 4L)   encoder input projections
    #   hdec_ref: VMEM scratch (M*Bp, E)    decoder hidden states
    b_pad, latent = z_ref.shape
    embed = x_ref.shape[1]
    seq = x_ref.shape[0] // b_pad
    n_dec = out_ref.shape[0] // b_pad

    # ---- hoisted constant loads (no per-step ref reads / broadcasts) ----
    ewh = ewh_ref[...]            # (L, 4L)
    dwh = dwh_ref[...]            # (E, 4E)
    ow = ow_ref[...]              # (E, E)
    ob = ob_ref[...]              # (1, E)

    def split_gates(g, h):
        # PyTorch LSTM gate order: i, f, g, o
        if 4 * h <= 128:
            # Narrow gate vector (decoder, 4E=128): two full-width EUP calls,
            # then cheap static lane extracts.
            sg = jax.nn.sigmoid(g)
            tg = jnp.tanh(g)
            return sg[:, 0:h], sg[:, h:2 * h], tg[:, 2 * h:3 * h], sg[:, 3 * h:4 * h]
        # Wide gate vector (encoder, 4L=512): each gate is already a full
        # 128-lane group; per-gate activations avoid redundant EUP work.
        i = jax.nn.sigmoid(g[:, 0:h])
        f = jax.nn.sigmoid(g[:, h:2 * h])
        gg = jnp.tanh(g[:, 2 * h:3 * h])
        o = jax.nn.sigmoid(g[:, 3 * h:4 * h])
        return i, f, gg, o

    # ---- encoder: all input projections in ONE matmul, off the serial chain ----
    xg_ref[...] = (jnp.dot(x_ref[...], ewx_ref[...],
                           preferred_element_type=jnp.float32) + eb_ref[...])

    def enc_body(t, carry):
        h, c = carry
        row = pl.multiple_of(t * b_pad, b_pad)
        gates = (xg_ref[pl.ds(row, b_pad), :]
                 + jnp.dot(h, ewh, preferred_element_type=jnp.float32))
        i, f, g, o = split_gates(gates, latent)
        c = f * c + i * g
        h = o * jnp.tanh(c)
        return (h, c)

    h0 = jnp.zeros((b_pad, latent), jnp.float32)
    c0 = jnp.zeros((b_pad, latent), jnp.float32)
    z, _ = lax.fori_loop(0, seq, enc_body, (h0, c0), unroll=True)
    z_ref[...] = z

    # ---- decoder: z is the input at every step -> hoist its projection ----
    zg = (jnp.dot(z, dwx_ref[...], preferred_element_type=jnp.float32)
          + db_ref[...])                                            # (Bp, 4E)

    def dec_body(t, carry):
        hd, cd = carry
        gates = zg + jnp.dot(hd, dwh, preferred_element_type=jnp.float32)
        i, f, g, o = split_gates(gates, embed)
        cd = f * cd + i * g
        hd = o * jnp.tanh(cd)
        row = pl.multiple_of(t * b_pad, b_pad)
        hdec_ref[pl.ds(row, b_pad), :] = hd
        return (hd, cd)

    hd0 = jnp.zeros((b_pad, embed), jnp.float32)
    cd0 = jnp.zeros((b_pad, embed), jnp.float32)
    lax.fori_loop(0, n_dec, dec_body, (hd0, cd0), unroll=True)

    # ---- batched output Linear: one matmul + one bulk store ----
    out_ref[...] = (jnp.dot(hdec_ref[...], ow,
                            preferred_element_type=jnp.float32) + ob)


def recurrent_medoid_autoencoder_fwd(x, params, max_medoids):
    """x: (batch, seq, embed) float32. Returns (out (B, M, E), z (B, L))."""
    batch, seq, embed = x.shape
    latent = params["enc_Wh"].shape[0]

    # Pad batch to the f32 sublane granularity; padded rows are discarded.
    b_pad = max(_SUBLANE, ((batch + _SUBLANE - 1) // _SUBLANE) * _SUBLANE)
    x_p = jnp.pad(x, ((0, b_pad - batch), (0, 0), (0, 0)))
    # Time-major 2-D layout (S*Bp, E): every in-kernel access is an aligned
    # 2-D row-block slice, no in-kernel reshapes.
    x2d = jnp.transpose(x_p, (1, 0, 2)).reshape(seq * b_pad, embed)

    vmem = pl.BlockSpec(memory_space=pltpu.MemorySpace.VMEM)
    out2d, z_p = pl.pallas_call(
        _rma_kernel,
        out_shape=(
            jax.ShapeDtypeStruct((max_medoids * b_pad, embed), jnp.float32),
            jax.ShapeDtypeStruct((b_pad, latent), jnp.float32),
        ),
        in_specs=[vmem] * 9,
        out_specs=(vmem, vmem),
        scratch_shapes=[
            pltpu.VMEM((seq * b_pad, 4 * latent), jnp.float32),     # encoder x-proj
            pltpu.VMEM((max_medoids * b_pad, embed), jnp.float32),  # decoder hiddens
        ],
    )(x2d,
      params["enc_Wx"], params["enc_Wh"], params["enc_b"],
      params["dec_Wx"], params["dec_Wh"], params["dec_b"],
      params["out_W"], params["out_b"])

    out = out2d.reshape(max_medoids, b_pad, embed)[:, :batch, :]
    out = jnp.transpose(out, (1, 0, 2))  # (B, M, E)
    return out, z_p[:batch]


def init_params(key, embed_dim, latent_dim):
    """Deterministic synthetic parameters, gates pre-fused (order i,f,g,o):
      enc_Wx: (E, 4L)  enc_Wh: (L, 4L)  enc_b: (1, 4L)  [b = b_ih + b_hh]
      dec_Wx: (L, 4E)  dec_Wh: (E, 4E)  dec_b: (1, 4E)
      out_W : (E, E)  (= Linear.weight.T)   out_b: (1, E)
    """
    ks = jax.random.split(key, 8)
    s_enc = 1.0 / np.sqrt(latent_dim)
    s_dec = 1.0 / np.sqrt(embed_dim)
    u = lambda k, shape, s: jax.random.uniform(k, shape, jnp.float32, -s, s)
    return dict(
        enc_Wx=u(ks[0], (embed_dim, 4 * latent_dim), s_enc),
        enc_Wh=u(ks[1], (latent_dim, 4 * latent_dim), s_enc),
        enc_b=u(ks[2], (1, 4 * latent_dim), s_enc),
        dec_Wx=u(ks[3], (latent_dim, 4 * embed_dim), s_dec),
        dec_Wh=u(ks[4], (embed_dim, 4 * embed_dim), s_dec),
        dec_b=u(ks[5], (1, 4 * embed_dim), s_dec),
        out_W=u(ks[6], (embed_dim, embed_dim), s_dec),
        out_b=u(ks[7], (1, embed_dim), s_dec),
    )


def _reference_fwd(x, params, max_medoids):
    """Pure-JAX reference (same math, no Pallas) for correctness checking."""
    def cell(xproj, h, c, Wh, H):
        g = xproj + h @ Wh
        i_ = jax.nn.sigmoid(g[:, 0:H])
        f_ = jax.nn.sigmoid(g[:, H:2 * H])
        g_ = jnp.tanh(g[:, 2 * H:3 * H])
        o_ = jax.nn.sigmoid(g[:, 3 * H:4 * H])
        c2 = f_ * c + i_ * g_
        return o_ * jnp.tanh(c2), c2

    B, S, E = x.shape
    L = params["enc_Wh"].shape[0]
    h = jnp.zeros((B, L)); c = jnp.zeros((B, L))
    for t in range(S):
        xp = x[:, t, :] @ params["enc_Wx"] + params["enc_b"]
        h, c = cell(xp, h, c, params["enc_Wh"], L)
    z = h
    zp = z @ params["dec_Wx"] + params["dec_b"]
    hd = jnp.zeros((B, E)); cd = jnp.zeros((B, E))
    outs = []
    for _ in range(max_medoids):
        hd, cd = cell(zp, hd, cd, params["dec_Wh"], E)
        outs.append(hd @ params["out_W"] + params["out_b"])
    return jnp.stack(outs, axis=1), z


if __name__ == "__main__":
    batch, seq, embed_dim, latent_dim, max_medoids = 2, 8, 32, 128, 8

    key = jax.random.PRNGKey(0)
    kx, kp = jax.random.split(key)
    x = jax.random.normal(kx, (batch, seq, embed_dim), jnp.float32)
    params = init_params(kp, embed_dim, latent_dim)

    out, z = jax.jit(
        lambda x, p: recurrent_medoid_autoencoder_fwd(x, p, max_medoids)
    )(x, params)
    jax.block_until_ready((out, z))

    out_ref, z_ref = _reference_fwd(x, params, max_medoids)
    assert out.shape == (batch, max_medoids, embed_dim)
    assert z.shape == (batch, latent_dim)
    np.testing.assert_allclose(np.asarray(out), np.asarray(out_ref), rtol=1e-5, atol=1e-5)
    np.testing.assert_allclose(np.asarray(z), np.asarray(z_ref), rtol=1e-5, atol=1e-5)

    print("KERNEL_OK")
</pallas_src>

<mosaic_0001>
module attributes {stable_mosaic.version = 11 : i64} {
  func.func @_rma_kernel(%arg0: memref<64x32xf32, #tpu.memory_space<vmem>>, %arg1: memref<32x512xf32, #tpu.memory_space<vmem>>, %arg2: memref<128x512xf32, #tpu.memory_space<vmem>>, %arg3: memref<1x512xf32, #tpu.memory_space<vmem>>, %arg4: memref<128x128xf32, #tpu.memory_space<vmem>>, %arg5: memref<32x128xf32, #tpu.memory_space<vmem>>, %arg6: memref<1x128xf32, #tpu.memory_space<vmem>>, %arg7: memref<32x32xf32, #tpu.memory_space<vmem>>, %arg8: memref<1x32xf32, #tpu.memory_space<vmem>>, %arg9: memref<64x32xf32, #tpu.memory_space<vmem>>, %arg10: memref<8x128xf32, #tpu.memory_space<vmem>>, %arg11: memref<64x512xf32, #tpu.memory_space<vmem>>, %arg12: memref<64x32xf32, #tpu.memory_space<vmem>>) attributes {dimension_semantics = [], scalar_prefetch = 0 : i64, scratch_operands = 2 : i64, tpu.core_type = #tpu.core_type<tc>} {
    %c0 = arith.constant 0 : index
    %c0_0 = arith.constant 0 : index
    %0 = vector.load %arg2[%c0, %c0_0] : memref<128x512xf32, #tpu.memory_space<vmem>>, vector<128x512xf32>
    %c0_1 = arith.constant 0 : index
    %c0_2 = arith.constant 0 : index
    %1 = vector.load %arg5[%c0_1, %c0_2] : memref<32x128xf32, #tpu.memory_space<vmem>>, vector<32x128xf32>
    %c0_3 = arith.constant 0 : index
    %c0_4 = arith.constant 0 : index
    %2 = vector.load %arg7[%c0_3, %c0_4] : memref<32x32xf32, #tpu.memory_space<vmem>>, vector<32x32xf32>
    %c0_5 = arith.constant 0 : index
    %c0_6 = arith.constant 0 : index
    %3 = vector.load %arg8[%c0_5, %c0_6] : memref<1x32xf32, #tpu.memory_space<vmem>>, vector<1x32xf32>
    %c0_7 = arith.constant 0 : index
    %c0_8 = arith.constant 0 : index
    %4 = vector.load %arg0[%c0_7, %c0_8] : memref<64x32xf32, #tpu.memory_space<vmem>>, vector<64x32xf32>
    %c0_9 = arith.constant 0 : index
    %c0_10 = arith.constant 0 : index
    %5 = vector.load %arg1[%c0_9, %c0_10] : memref<32x512xf32, #tpu.memory_space<vmem>>, vector<32x512xf32>
    %cst = arith.constant dense<0.000000e+00> : vector<64x512xf32>
    %6 = tpu.matmul %4, %5, %cst {dimension_numbers = #tpu.dot_dimension_numbers<[1], [0], [0], [1], [0, 0, 1, 1], [], []>} : vector<64x32xf32>, vector<32x512xf32>, vector<64x512xf32> -> vector<64x512xf32>
    %c0_11 = arith.constant 0 : index
    %c0_12 = arith.constant 0 : index
    %7 = vector.load %arg3[%c0_11, %c0_12] : memref<1x512xf32, #tpu.memory_space<vmem>>, vector<1x512xf32>
    %8 = vector.broadcast %7 : vector<1x512xf32> to vector<64x512xf32>
    %9 = arith.addf %6, %8 : vector<64x512xf32>
    %c0_13 = arith.constant 0 : index
    %c0_14 = arith.constant 0 : index
    %10 = vector.load %arg11[%c0_13, %c0_14] : memref<64x512xf32, #tpu.memory_space<vmem>>, vector<64x512xf32>
    tpu.vector_store %arg11[%c0_13, %c0_14], %9 {strides = array<i32>} : memref<64x512xf32, #tpu.memory_space<vmem>>, vector<64x512xf32>,
    %cst_15 = arith.constant 0.000000e+00 : f32
    %11 = vector.broadcast %cst_15 : f32 to vector<8x128xf32>
    %cst_16 = arith.constant 0.000000e+00 : f32
    %12 = vector.broadcast %cst_16 : f32 to vector<8x128xf32>
    %c0_i32 = arith.constant 0 : i32
    %c8_i32 = arith.constant 8 : i32
    %13 = arith.muli %c0_i32, %c8_i32 : i32
    %14 = tpu.assume_multiple %13, 8 : i32
    %15 = arith.index_cast %14 : i32 to index
    %c0_17 = arith.constant 0 : index
    %16 = vector.load %arg11[%15, %c0_17] : memref<64x512xf32, #tpu.memory_space<vmem>>, vector<8x512xf32>
    %cst_18 = arith.constant dense<0.000000e+00> : vector<8x512xf32>
    %17 = tpu.matmul %11, %0, %cst_18 {dimension_numbers = #tpu.dot_dimension_numbers<[1], [0], [0], [1], [0, 0, 1, 1], [], []>} : vector<8x128xf32>, vector<128x512xf32>, vector<8x512xf32> -> vector<8x512xf32>
    %18 = arith.addf %16, %17 : vector<8x512xf32>
    %19 = vector.extract_strided_slice %18 {offsets = [0, 0], sizes = [8, 128], strides = [1, 1]} : vector<8x512xf32> to vector<8x128xf32>
    %20 = arith.negf %19 : vector<8x128xf32>
    %21 = math.exp %20 : vector<8x128xf32>
    %cst_19 = arith.constant 1.000000e+00 : f32
    %22 = vector.broadcast %cst_19 : f32 to vector<8x128xf32>
    %23 = arith.addf %22, %21 : vector<8x128xf32>
    %24 = arith.divf %22, %23 : vector<8x128xf32>
    %25 = vector.extract_strided_slice %18 {offsets = [0, 128], sizes = [8, 128], strides = [1, 1]} : vector<8x512xf32> to vector<8x128xf32>
    %26 = arith.negf %25 : vector<8x128xf32>
    %27 = math.exp %26 : vector<8x128xf32>
    %cst_20 = arith.constant 1.000000e+00 : f32
    %28 = vector.broadcast %cst_20 : f32 to vector<8x128xf32>
    %29 = arith.addf %28, %27 : vector<8x128xf32>
    %30 = arith.divf %28, %29 : vector<8x128xf32>
    %31 = vector.extract_strided_slice %18 {offsets = [0, 256], sizes = [8, 128], strides = [1, 1]} : vector<8x512xf32> to vector<8x128xf32>
    %32 = math.tanh %31 : vector<8x128xf32>
    %33 = vector.extract_strided_slice %18 {offsets = [0, 384], sizes = [8, 128], strides = [1, 1]} : vector<8x512xf32> to vector<8x128xf32>
    %34 = arith.negf %33 : vector<8x128xf32>
    %35 = math.exp %34 : vector<8x128xf32>
    %cst_21 = arith.constant 1.000000e+00 : f32
    %36 = vector.broadcast %cst_21 : f32 to vector<8x128xf32>
    %37 = arith.addf %36, %35 : vector<8x128xf32>
    %38 = arith.divf %36, %37 : vector<8x128xf32>
    %39 = arith.mulf %30, %12 : vector<8x128xf32>
    %40 = arith.mulf %24, %32 : vector<8x128xf32>
    %41 = arith.addf %39, %40 : vector<8x128xf32>
    %42 = math.tanh %41 : vector<8x128xf32>
    %43 = arith.mulf %38, %42 : vector<8x128xf32>
    %c1_i32 = arith.constant 1 : i32
    %c8_i32_22 = arith.constant 8 : i32
    %44 = arith.muli %c1_i32, %c8_i32_22 : i32
    %45 = tpu.assume_multiple %44, 8 : i32
    %46 = arith.index_cast %45 : i32 to index
    %c0_23 = arith.constant 0 : index
    %47 = vector.load %arg11[%46, %c0_23] : memref<64x512xf32, #tpu.memory_space<vmem>>, vector<8x512xf32>
    %cst_24 = arith.constant dense<0.000000e+00> : vector<8x512xf32>
    %48 = tpu.matmul %43, %0, %cst_24 {dimension_numbers = #tpu.dot_dimension_numbers<[1], [0], [0], [1], [0, 0, 1, 1], [], []>} : vector<8x128xf32>, vector<128x512xf32>, vector<8x512xf32> -> vector<8x512xf32>
    %49 = arith.addf %47, %48 : vector<8x512xf32>
    %50 = vector.extract_strided_slice %49 {offsets = [0, 0], sizes = [8, 128], strides = [1, 1]} : vector<8x512xf32> to vector<8x128xf32>
    %51 = arith.negf %50 : vector<8x128xf32>
    %52 = math.exp %51 : vector<8x128xf32>
    %cst_25 = arith.constant 1.000000e+00 : f32
    %53 = vector.broadcast %cst_25 : f32 to vector<8x128xf32>
    %54 = arith.addf %53, %52 : vector<8x128xf32>
    %55 = arith.divf %53, %54 : vector<8x128xf32>
    %56 = vector.extract_strided_slice %49 {offsets = [0, 128], sizes = [8, 128], strides = [1, 1]} : vector<8x512xf32> to vector<8x128xf32>
    %57 = arith.negf %56 : vector<8x128xf32>
    %58 = math.exp %57 : vector<8x128xf32>
    %cst_26 = arith.constant 1.000000e+00 : f32
    %59 = vector.broadcast %cst_26 : f32 to vector<8x128xf32>
    %60 = arith.addf %59, %58 : vector<8x128xf32>
    %61 = arith.divf %59, %60 : vector<8x128xf32>
    %62 = vector.extract_strided_slice %49 {offsets = [0, 256], sizes = [8, 128], strides = [1, 1]} : vector<8x512xf32> to vector<8x128xf32>
    %63 = math.tanh %62 : vector<8x128xf32>
    %64 = vector.extract_strided_slice %49 {offsets = [0, 384], sizes = [8, 128], strides = [1, 1]} : vector<8x512xf32> to vector<8x128xf32>
    %65 = arith.negf %64 : vector<8x128xf32>
    %66 = math.exp %65 : vector<8x128xf32>
    %cst_27 = arith.constant 1.000000e+00 : f32
    %67 = vector.broadcast %cst_27 : f32 to vector<8x128xf32>
    %68 = arith.addf %67, %66 : vector<8x128xf32>
    %69 = arith.divf %67, %68 : vector<8x128xf32>
    %70 = arith.mulf %61, %41 : vector<8x128xf32>
    %71 = arith.mulf %55, %63 : vector<8x128xf32>
    %72 = arith.addf %70, %71 : vector<8x128xf32>
    %73 = math.tanh %72 : vector<8x128xf32>
    %74 = arith.mulf %69, %73 : vector<8x128xf32>
    %c2_i32 = arith.constant 2 : i32
    %c8_i32_28 = arith.constant 8 : i32
    %75 = arith.muli %c2_i32, %c8_i32_28 : i32
    %76 = tpu.assume_multiple %75, 8 : i32
    %77 = arith.index_cast %76 : i32 to index
    %c0_29 = arith.constant 0 : index
    %78 = vector.load %arg11[%77, %c0_29] : memref<64x512xf32, #tpu.memory_space<vmem>>, vector<8x512xf32>
    %cst_30 = arith.constant dense<0.000000e+00> : vector<8x512xf32>
    %79 = tpu.matmul %74, %0, %cst_30 {dimension_numbers = #tpu.dot_dimension_numbers<[1], [0], [0], [1], [0, 0, 1, 1], [], []>} : vector<8x128xf32>, vector<128x512xf32>, vector<8x512xf32> -> vector<8x512xf32>
    %80 = arith.addf %78, %79 : vector<8x512xf32>
    %81 = vector.extract_strided_slice %80 {offsets = [0, 0], sizes = [8, 128], strides = [1, 1]} : vector<8x512xf32> to vector<8x128xf32>
    %82 = arith.negf %81 : vector<8x128xf32>
    %83 = math.exp %82 : vector<8x128xf32>
    %cst_31 = arith.constant 1.000000e+00 : f32
    %84 = vector.broadcast %cst_31 : f32 to vector<8x128xf32>
    %85 = arith.addf %84, %83 : vector<8x128xf32>
    %86 = arith.divf %84, %85 : vector<8x128xf32>
    %87 = vector.extract_strided_slice %80 {offsets = [0, 128], sizes = [8, 128], strides = [1, 1]} : vector<8x512xf32> to vector<8x128xf32>
    %88 = arith.negf %87 : vector<8x128xf32>
    %89 = math.exp %88 : vector<8x128xf32>
    %cst_32 = arith.constant 1.000000e+00 : f32
    %90 = vector.broadcast %cst_32 : f32 to vector<8x128xf32>
    %91 = arith.addf %90, %89 : vector<8x128xf32>
    %92 = arith.divf %90, %91 : vector<8x128xf32>
    %93 = vector.extract_strided_slice %80 {offsets = [0, 256], sizes = [8, 128], strides = [1, 1]} : vector<8x512xf32> to vector<8x128xf32>
    %94 = math.tanh %93 : vector<8x128xf32>
    %95 = vector.extract_strided_slice %80 {offsets = [0, 384], sizes = [8, 128], strides = [1, 1]} : vector<8x512xf32> to vector<8x128xf32>
    %96 = arith.negf %95 : vector<8x128xf32>
    %97 = math.exp %96 : vector<8x128xf32>
    %cst_33 = arith.constant 1.000000e+00 : f32
    %98 = vector.broadcast %cst_33 : f32 to vector<8x128xf32>
    %99 = arith.addf %98, %97 : vector<8x128xf32>
    %100 = arith.divf %98, %99 : vector<8x128xf32>
    %101 = arith.mulf %92, %72 : vector<8x128xf32>
    %102 = arith.mulf %86, %94 : vector<8x128xf32>
    %103 = arith.addf %101, %102 : vector<8x128xf32>
    %104 = math.tanh %103 : vector<8x128xf32>
    %105 = arith.mulf %100, %104 : vector<8x128xf32>
    %c3_i32 = arith.constant 3 : i32
    %c8_i32_34 = arith.constant 8 : i32
    %106 = arith.muli %c3_i32, %c8_i32_34 : i32
    %107 = tpu.assume_multiple %106, 8 : i32
    %108 = arith.index_cast %107 : i32 to index
    %c0_35 = arith.constant 0 : index
    %109 = vector.load %arg11[%108, %c0_35] : memref<64x512xf32, #tpu.memory_space<vmem>>, vector<8x512xf32>
    %cst_36 = arith.constant dense<0.000000e+00> : vector<8x512xf32>
    %110 = tpu.matmul %105, %0, %cst_36 {dimension_numbers = #tpu.dot_dimension_numbers<[1], [0], [0], [1], [0, 0, 1, 1], [], []>} : vector<8x128xf32>, vector<128x512xf32>, vector<8x512xf32> -> vector<8x512xf32>
    %111 = arith.addf %109, %110 : vector<8x512xf32>
    %112 = vector.extract_strided_slice %111 {offsets = [0, 0], sizes = [8, 128], strides = [1, 1]} : vector<8x512xf32> to vector<8x128xf32>
    %113 = arith.negf %112 : vector<8x128xf32>
    %114 = math.exp %113 : vector<8x128xf32>
    %cst_37 = arith.constant 1.000000e+00 : f32
    %115 = vector.broadcast %cst_37 : f32 to vector<8x128xf32>
    %116 = arith.addf %115, %114 : vector<8x128xf32>
    %117 = arith.divf %115, %116 : vector<8x128xf32>
    %118 = vector.extract_strided_slice %111 {offsets = [0, 128], sizes = [8, 128], strides = [1, 1]} : vector<8x512xf32> to vector<8x128xf32>
    %119 = arith.negf %118 : vector<8x128xf32>
    %120 = math.exp %119 : vector<8x128xf32>
    %cst_38 = arith.constant 1.000000e+00 : f32
    %121 = vector.broadcast %cst_38 : f32 to vector<8x128xf32>
    %122 = arith.addf %121, %120 : vector<8x128xf32>
    %123 = arith.divf %121, %122 : vector<8x128xf32>
    %124 = vector.extract_strided_slice %111 {offsets = [0, 256], sizes = [8, 128], strides = [1, 1]} : vector<8x512xf32> to vector<8x128xf32>
    %125 = math.tanh %124 : vector<8x128xf32>
    %126 = vector.extract_strided_slice %111 {offsets = [0, 384], sizes = [8, 128], strides = [1, 1]} : vector<8x512xf32> to vector<8x128xf32>
    %127 = arith.negf %126 : vector<8x128xf32>
    %128 = math.exp %127 : vector<8x128xf32>
    %cst_39 = arith.constant 1.000000e+00 : f32
    %129 = vector.broadcast %cst_39 : f32 to vector<8x128xf32>
    %130 = arith.addf %129, %128 : vector<8x128xf32>
    %131 = arith.divf %129, %130 : vector<8x128xf32>
    %132 = arith.mulf %123, %103 : vector<8x128xf32>
    %133 = arith.mulf %117, %125 : vector<8x128xf32>
    %134 = arith.addf %132, %133 : vector<8x128xf32>
    %135 = math.tanh %134 : vector<8x128xf32>
    %136 = arith.mulf %131, %135 : vector<8x128xf32>
    %c4_i32 = arith.constant 4 : i32
    %c8_i32_40 = arith.constant 8 : i32
    %137 = arith.muli %c4_i32, %c8_i32_40 : i32
    %138 = tpu.assume_multiple %137, 8 : i32
    %139 = arith.index_cast %138 : i32 to index
    %c0_41 = arith.constant 0 : index
    %140 = vector.load %arg11[%139, %c0_41] : memref<64x512xf32, #tpu.memory_space<vmem>>, vector<8x512xf32>
    %cst_42 = arith.constant dense<0.000000e+00> : vector<8x512xf32>
    %141 = tpu.matmul %136, %0, %cst_42 {dimension_numbers = #tpu.dot_dimension_numbers<[1], [0], [0], [1], [0, 0, 1, 1], [], []>} : vector<8x128xf32>, vector<128x512xf32>, vector<8x512xf32> -> vector<8x512xf32>
    %142 = arith.addf %140, %141 : vector<8x512xf32>
    %143 = vector.extract_strided_slice %142 {offsets = [0, 0], sizes = [8, 128], strides = [1, 1]} : vector<8x512xf32> to vector<8x128xf32>
    %144 = arith.negf %143 : vector<8x128xf32>
    %145 = math.exp %144 : vector<8x128xf32>
    %cst_43 = arith.constant 1.000000e+00 : f32
    %146 = vector.broadcast %cst_43 : f32 to vector<8x128xf32>
    %147 = arith.addf %146, %145 : vector<8x128xf32>
    %148 = arith.divf %146, %147 : vector<8x128xf32>
    %149 = vector.extract_strided_slice %142 {offsets = [0, 128], sizes = [8, 128], strides = [1, 1]} : vector<8x512xf32> to vector<8x128xf32>
    %150 = arith.negf %149 : vector<8x128xf32>
    %151 = math.exp %150 : vector<8x128xf32>
    %cst_44 = arith.constant 1.000000e+00 : f32
    %152 = vector.broadcast %cst_44 : f32 to vector<8x128xf32>
    %153 = arith.addf %152, %151 : vector<8x128xf32>
    %154 = arith.divf %152, %153 : vector<8x128xf32>
    %155 = vector.extract_strided_slice %142 {offsets = [0, 256], sizes = [8, 128], strides = [1, 1]} : vector<8x512xf32> to vector<8x128xf32>
    %156 = math.tanh %155 : vector<8x128xf32>
    %157 = vector.extract_strided_slice %142 {offsets = [0, 384], sizes = [8, 128], strides = [1, 1]} : vector<8x512xf32> to vector<8x128xf32>
    %158 = arith.negf %157 : vector<8x128xf32>
    %159 = math.exp %158 : vector<8x128xf32>
    %cst_45 = arith.constant 1.000000e+00 : f32
    %160 = vector.broadcast %cst_45 : f32 to vector<8x128xf32>
    %161 = arith.addf %160, %159 : vector<8x128xf32>
    %162 = arith.divf %160, %161 : vector<8x128xf32>
    %163 = arith.mulf %154, %134 : vector<8x128xf32>
    %164 = arith.mulf %148, %156 : vector<8x128xf32>
    %165 = arith.addf %163, %164 : vector<8x128xf32>
    %166 = math.tanh %165 : vector<8x128xf32>
    %167 = arith.mulf %162, %166 : vector<8x128xf32>
    %c5_i32 = arith.constant 5 : i32
    %c8_i32_46 = arith.constant 8 : i32
    %168 = arith.muli %c5_i32, %c8_i32_46 : i32
    %169 = tpu.assume_multiple %168, 8 : i32
    %170 = arith.index_cast %169 : i32 to index
    %c0_47 = arith.constant 0 : index
    %171 = vector.load %arg11[%170, %c0_47] : memref<64x512xf32, #tpu.memory_space<vmem>>, vector<8x512xf32>
    %cst_48 = arith.constant dense<0.000000e+00> : vector<8x512xf32>
    %172 = tpu.matmul %167, %0, %cst_48 {dimension_numbers = #tpu.dot_dimension_numbers<[1], [0], [0], [1], [0, 0, 1, 1], [], []>} : vector<8x128xf32>, vector<128x512xf32>, vector<8x512xf32> -> vector<8x512xf32>
    %173 = arith.addf %171, %172 : vector<8x512xf32>
    %174 = vector.extract_strided_slice %173 {offsets = [0, 0], sizes = [8, 128], strides = [1, 1]} : vector<8x512xf32> to vector<8x128xf32>
    %175 = arith.negf %174 : vector<8x128xf32>
    %176 = math.exp %175 : vector<8x128xf32>
    %cst_49 = arith.constant 1.000000e+00 : f32
    %177 = vector.broadcast %cst_49 : f32 to vector<8x128xf32>
    %178 = arith.addf %177, %176 : vector<8x128xf32>
    %179 = arith.divf %177, %178 : vector<8x128xf32>
    %180 = vector.extract_strided_slice %173 {offsets = [0, 128], sizes = [8, 128], strides = [1, 1]} : vector<8x512xf32> to vector<8x128xf32>
    %181 = arith.negf %180 : vector<8x128xf32>
    %182 = math.exp %181 : vector<8x128xf32>
    %cst_50 = arith.constant 1.000000e+00 : f32
    %183 = vector.broadcast %cst_50 : f32 to vector<8x128xf32>
    %184 = arith.addf %183, %182 : vector<8x128xf32>
    %185 = arith.divf %183, %184 : vector<8x128xf32>
    %186 = vector.extract_strided_slice %173 {offsets = [0, 256], sizes = [8, 128], strides = [1, 1]} : vector<8x512xf32> to vector<8x128xf32>
    %187 = math.tanh %186 : vector<8x128xf32>
    %188 = vector.extract_strided_slice %173 {offsets = [0, 384], sizes = [8, 128], strides = [1, 1]} : vector<8x512xf32> to vector<8x128xf32>
    %189 = arith.negf %188 : vector<8x128xf32>
    %190 = math.exp %189 : vector<8x128xf32>
    %cst_51 = arith.constant 1.000000e+00 : f32
    %191 = vector.broadcast %cst_51 : f32 to vector<8x128xf32>
    %192 = arith.addf %191, %190 : vector<8x128xf32>
    %193 = arith.divf %191, %192 : vector<8x128xf32>
    %194 = arith.mulf %185, %165 : vector<8x128xf32>
    %195 = arith.mulf %179, %187 : vector<8x128xf32>
    %196 = arith.addf %194, %195 : vector<8x128xf32>
    %197 = math.tanh %196 : vector<8x128xf32>
    %198 = arith.mulf %193, %197 : vector<8x128xf32>
    %c6_i32 = arith.constant 6 : i32
    %c8_i32_52 = arith.constant 8 : i32
    %199 = arith.muli %c6_i32, %c8_i32_52 : i32
    %200 = tpu.assume_multiple %199, 8 : i32
    %201 = arith.index_cast %200 : i32 to index
    %c0_53 = arith.constant 0 : index
    %202 = vector.load %arg11[%201, %c0_53] : memref<64x512xf32, #tpu.memory_space<vmem>>, vector<8x512xf32>
    %cst_54 = arith.constant dense<0.000000e+00> : vector<8x512xf32>
    %203 = tpu.matmul %198, %0, %cst_54 {dimension_numbers = #tpu.dot_dimension_numbers<[1], [0], [0], [1], [0, 0, 1, 1], [], []>} : vector<8x128xf32>, vector<128x512xf32>, vector<8x512xf32> -> vector<8x512xf32>
    %204 = arith.addf %202, %203 : vector<8x512xf32>
    %205 = vector.extract_strided_slice %204 {offsets = [0, 0], sizes = [8, 128], strides = [1, 1]} : vector<8x512xf32> to vector<8x128xf32>
    %206 = arith.negf %205 : vector<8x128xf32>
    %207 = math.exp %206 : vector<8x128xf32>
    %cst_55 = arith.constant 1.000000e+00 : f32
    %208 = vector.broadcast %cst_55 : f32 to vector<8x128xf32>
    %209 = arith.addf %208, %207 : vector<8x128xf32>
    %210 = arith.divf %208, %209 : vector<8x128xf32>
    %211 = vector.extract_strided_slice %204 {offsets = [0, 128], sizes = [8, 128], strides = [1, 1]} : vector<8x512xf32> to vector<8x128xf32>
    %212 = arith.negf %211 : vector<8x128xf32>
    %213 = math.exp %212 : vector<8x128xf32>
    %cst_56 = arith.constant 1.000000e+00 : f32
    %214 = vector.broadcast %cst_56 : f32 to vector<8x128xf32>
    %215 = arith.addf %214, %213 : vector<8x128xf32>
    %216 = arith.divf %214, %215 : vector<8x128xf32>
    %217 = vector.extract_strided_slice %204 {offsets = [0, 256], sizes = [8, 128], strides = [1, 1]} : vector<8x512xf32> to vector<8x128xf32>
    %218 = math.tanh %217 : vector<8x128xf32>
    %219 = vector.extract_strided_slice %204 {offsets = [0, 384], sizes = [8, 128], strides = [1, 1]} : vector<8x512xf32> to vector<8x128xf32>
    %220 = arith.negf %219 : vector<8x128xf32>
    %221 = math.exp %220 : vector<8x128xf32>
    %cst_57 = arith.constant 1.000000e+00 : f32
    %222 = vector.broadcast %cst_57 : f32 to vector<8x128xf32>
    %223 = arith.addf %222, %221 : vector<8x128xf32>
    %224 = arith.divf %222, %223 : vector<8x128xf32>
    %225 = arith.mulf %216, %196 : vector<8x128xf32>
    %226 = arith.mulf %210, %218 : vector<8x128xf32>
    %227 = arith.addf %225, %226 : vector<8x128xf32>
    %228 = math.tanh %227 : vector<8x128xf32>
    %229 = arith.mulf %224, %228 : vector<8x128xf32>
    %c7_i32 = arith.constant 7 : i32
    %c8_i32_58 = arith.constant 8 : i32
    %230 = arith.muli %c7_i32, %c8_i32_58 : i32
    %231 = tpu.assume_multiple %230, 8 : i32
    %232 = arith.index_cast %231 : i32 to index
    %c0_59 = arith.constant 0 : index
    %233 = vector.load %arg11[%232, %c0_59] : memref<64x512xf32, #tpu.memory_space<vmem>>, vector<8x512xf32>
    %cst_60 = arith.constant dense<0.000000e+00> : vector<8x512xf32>
    %234 = tpu.matmul %229, %0, %cst_60 {dimension_numbers = #tpu.dot_dimension_numbers<[1], [0], [0], [1], [0, 0, 1, 1], [], []>} : vector<8x128xf32>, vector<128x512xf32>, vector<8x512xf32> -> vector<8x512xf32>
    %235 = arith.addf %233, %234 : vector<8x512xf32>
    %236 = vector.extract_strided_slice %235 {offsets = [0, 0], sizes = [8, 128], strides = [1, 1]} : vector<8x512xf32> to vector<8x128xf32>
    %237 = arith.negf %236 : vector<8x128xf32>
    %238 = math.exp %237 : vector<8x128xf32>
    %cst_61 = arith.constant 1.000000e+00 : f32
    %239 = vector.broadcast %cst_61 : f32 to vector<8x128xf32>
    %240 = arith.addf %239, %238 : vector<8x128xf32>
    %241 = arith.divf %239, %240 : vector<8x128xf32>
    %242 = vector.extract_strided_slice %235 {offsets = [0, 128], sizes = [8, 128], strides = [1, 1]} : vector<8x512xf32> to vector<8x128xf32>
    %243 = arith.negf %242 : vector<8x128xf32>
    %244 = math.exp %243 : vector<8x128xf32>
    %cst_62 = arith.constant 1.000000e+00 : f32
    %245 = vector.broadcast %cst_62 : f32 to vector<8x128xf32>
    %246 = arith.addf %245, %244 : vector<8x128xf32>
    %247 = arith.divf %245, %246 : vector<8x128xf32>
    %248 = vector.extract_strided_slice %235 {offsets = [0, 256], sizes = [8, 128], strides = [1, 1]} : vector<8x512xf32> to vector<8x128xf32>
    %249 = math.tanh %248 : vector<8x128xf32>
    %250 = vector.extract_strided_slice %235 {offsets = [0, 384], sizes = [8, 128], strides = [1, 1]} : vector<8x512xf32> to vector<8x128xf32>
    %251 = arith.negf %250 : vector<8x128xf32>
    %252 = math.exp %251 : vector<8x128xf32>
    %cst_63 = arith.constant 1.000000e+00 : f32
    %253 = vector.broadcast %cst_63 : f32 to vector<8x128xf32>
    %254 = arith.addf %253, %252 : vector<8x128xf32>
    %255 = arith.divf %253, %254 : vector<8x128xf32>
    %256 = arith.mulf %247, %227 : vector<8x128xf32>
    %257 = arith.mulf %241, %249 : vector<8x128xf32>
    %258 = arith.addf %256, %257 : vector<8x128xf32>
    %259 = math.tanh %258 : vector<8x128xf32>
    %260 = arith.mulf %255, %259 : vector<8x128xf32>
    %c8_i32_64 = arith.constant 8 : i32
    %c0_65 = arith.constant 0 : index
    %c0_66 = arith.constant 0 : index
    %261 = vector.load %arg10[%c0_65, %c0_66] : memref<8x128xf32, #tpu.memory_space<vmem>>, vector<8x128xf32>
    tpu.vector_store %arg10[%c0_65, %c0_66], %260 {strides = array<i32>} : memref<8x128xf32, #tpu.memory_space<vmem>>, vector<8x128xf32>,
    %c0_67 = arith.constant 0 : index
    %c0_68 = arith.constant 0 : index
    %262 = vector.load %arg4[%c0_67, %c0_68] : memref<128x128xf32, #tpu.memory_space<vmem>>, vector<128x128xf32>
    %cst_69 = arith.constant dense<0.000000e+00> : vector<8x128xf32>
    %263 = tpu.matmul %260, %262, %cst_69 {dimension_numbers = #tpu.dot_dimension_numbers<[1], [0], [0], [1], [0, 0, 1, 1], [], []>} : vector<8x128xf32>, vector<128x128xf32>, vector<8x128xf32> -> vector<8x128xf32>
    %c0_70 = arith.constant 0 : index
    %c0_71 = arith.constant 0 : index
    %264 = vector.load %arg6[%c0_70, %c0_71] : memref<1x128xf32, #tpu.memory_space<vmem>>, vector<1x128xf32>
    %265 = vector.broadcast %264 : vector<1x128xf32> to vector<8x128xf32>
    %266 = arith.addf %263, %265 : vector<8x128xf32>
    %cst_72 = arith.constant 0.000000e+00 : f32
    %267 = vector.broadcast %cst_72 : f32 to vector<8x32xf32>
    %cst_73 = arith.constant 0.000000e+00 : f32
    %268 = vector.broadcast %cst_73 : f32 to vector<8x32xf32>
    %c0_i32_74 = arith.constant 0 : i32
    %cst_75 = arith.constant dense<0.000000e+00> : vector<8x128xf32>
    %269 = tpu.matmul %267, %1, %cst_75 {dimension_numbers = #tpu.dot_dimension_numbers<[1], [0], [0], [1], [0, 0, 1, 1], [], []>} : vector<8x32xf32>, vector<32x128xf32>, vector<8x128xf32> -> vector<8x128xf32>
    %270 = arith.addf %266, %269 : vector<8x128xf32>
    %271 = arith.negf %270 : vector<8x128xf32>
    %272 = math.exp %271 : vector<8x128xf32>
    %cst_76 = arith.constant 1.000000e+00 : f32
    %273 = vector.broadcast %cst_76 : f32 to vector<8x128xf32>
    %274 = arith.addf %273, %272 : vector<8x128xf32>
    %275 = arith.divf %273, %274 : vector<8x128xf32>
    %276 = math.tanh %270 : vector<8x128xf32>
    %277 = vector.extract_strided_slice %275 {offsets = [0, 0], sizes = [8, 32], strides = [1, 1]} : vector<8x128xf32> to vector<8x32xf32>
    %278 = vector.extract_strided_slice %275 {offsets = [0, 32], sizes = [8, 32], strides = [1, 1]} : vector<8x128xf32> to vector<8x32xf32>
    %279 = vector.extract_strided_slice %276 {offsets = [0, 64], sizes = [8, 32], strides = [1, 1]} : vector<8x128xf32> to vector<8x32xf32>
    %280 = vector.extract_strided_slice %275 {offsets = [0, 96], sizes = [8, 32], strides = [1, 1]} : vector<8x128xf32> to vector<8x32xf32>
    %281 = arith.mulf %278, %268 : vector<8x32xf32>
    %282 = arith.mulf %277, %279 : vector<8x32xf32>
    %283 = arith.addf %281, %282 : vector<8x32xf32>
    %284 = math.tanh %283 : vector<8x32xf32>
    %285 = arith.mulf %280, %284 : vector<8x32xf32>
    %c8_i32_77 = arith.constant 8 : i32
    %286 = arith.muli %c0_i32_74, %c8_i32_77 : i32
    %287 = tpu.assume_multiple %286, 8 : i32
    %288 = arith.index_cast %287 : i32 to index
    %c0_78 = arith.constant 0 : index
    %289 = vector.load %arg12[%288, %c0_78] : memref<64x32xf32, #tpu.memory_space<vmem>>, vector<8x32xf32>
    tpu.vector_store %arg12[%288, %c0_78], %285 {strides = array<i32>} : memref<64x32xf32, #tpu.memory_space<vmem>>, vector<8x32xf32>,
    %c1_i32_79 = arith.constant 1 : i32
    %cst_80 = arith.constant dense<0.000000e+00> : vector<8x128xf32>
    %290 = tpu.matmul %285, %1, %cst_80 {dimension_numbers = #tpu.dot_dimension_numbers<[1], [0], [0], [1], [0, 0, 1, 1], [], []>} : vector<8x32xf32>, vector<32x128xf32>, vector<8x128xf32> -> vector<8x128xf32>
    %291 = arith.addf %266, %290 : vector<8x128xf32>
    %292 = arith.negf %291 : vector<8x128xf32>
    %293 = math.exp %292 : vector<8x128xf32>
    %cst_81 = arith.constant 1.000000e+00 : f32
    %294 = vector.broadcast %cst_81 : f32 to vector<8x128xf32>
    %295 = arith.addf %294, %293 : vector<8x128xf32>
    %296 = arith.divf %294, %295 : vector<8x128xf32>
    %297 = math.tanh %291 : vector<8x128xf32>
    %298 = vector.extract_strided_slice %296 {offsets = [0, 0], sizes = [8, 32], strides = [1, 1]} : vector<8x128xf32> to vector<8x32xf32>
    %299 = vector.extract_strided_slice %296 {offsets = [0, 32], sizes = [8, 32], strides = [1, 1]} : vector<8x128xf32> to vector<8x32xf32>
    %300 = vector.extract_strided_slice %297 {offsets = [0, 64], sizes = [8, 32], strides = [1, 1]} : vector<8x128xf32> to vector<8x32xf32>
    %301 = vector.extract_strided_slice %296 {offsets = [0, 96], sizes = [8, 32], strides = [1, 1]} : vector<8x128xf32> to vector<8x32xf32>
    %302 = arith.mulf %299, %283 : vector<8x32xf32>
    %303 = arith.mulf %298, %300 : vector<8x32xf32>
    %304 = arith.addf %302, %303 : vector<8x32xf32>
    %305 = math.tanh %304 : vector<8x32xf32>
    %306 = arith.mulf %301, %305 : vector<8x32xf32>
    %c8_i32_82 = arith.constant 8 : i32
    %307 = arith.muli %c1_i32_79, %c8_i32_82 : i32
    %308 = tpu.assume_multiple %307, 8 : i32
    %309 = arith.index_cast %308 : i32 to index
    %c0_83 = arith.constant 0 : index
    %310 = vector.load %arg12[%309, %c0_83] : memref<64x32xf32, #tpu.memory_space<vmem>>, vector<8x32xf32>
    tpu.vector_store %arg12[%309, %c0_83], %306 {strides = array<i32>} : memref<64x32xf32, #tpu.memory_space<vmem>>, vector<8x32xf32>,
    %c2_i32_84 = arith.constant 2 : i32
    %cst_85 = arith.constant dense<0.000000e+00> : vector<8x128xf32>
    %311 = tpu.matmul %306, %1, %cst_85 {dimension_numbers = #tpu.dot_dimension_numbers<[1], [0], [0], [1], [0, 0, 1, 1], [], []>} : vector<8x32xf32>, vector<32x128xf32>, vector<8x128xf32> -> vector<8x128xf32>
    %312 = arith.addf %266, %311 : vector<8x128xf32>
    %313 = arith.negf %312 : vector<8x128xf32>
    %314 = math.exp %313 : vector<8x128xf32>
    %cst_86 = arith.constant 1.000000e+00 : f32
    %315 = vector.broadcast %cst_86 : f32 to vector<8x128xf32>
    %316 = arith.addf %315, %314 : vector<8x128xf32>
    %317 = arith.divf %315, %316 : vector<8x128xf32>
    %318 = math.tanh %312 : vector<8x128xf32>
    %319 = vector.extract_strided_slice %317 {offsets = [0, 0], sizes = [8, 32], strides = [1, 1]} : vector<8x128xf32> to vector<8x32xf32>
    %320 = vector.extract_strided_slice %317 {offsets = [0, 32], sizes = [8, 32], strides = [1, 1]} : vector<8x128xf32> to vector<8x32xf32>
    %321 = vector.extract_strided_slice %318 {offsets = [0, 64], sizes = [8, 32], strides = [1, 1]} : vector<8x128xf32> to vector<8x32xf32>
    %322 = vector.extract_strided_slice %317 {offsets = [0, 96], sizes = [8, 32], strides = [1, 1]} : vector<8x128xf32> to vector<8x32xf32>
    %323 = arith.mulf %320, %304 : vector<8x32xf32>
    %324 = arith.mulf %319, %321 : vector<8x32xf32>
    %325 = arith.addf %323, %324 : vector<8x32xf32>
    %326 = math.tanh %325 : vector<8x32xf32>
    %327 = arith.mulf %322, %326 : vector<8x32xf32>
    %c8_i32_87 = arith.constant 8 : i32
    %328 = arith.muli %c2_i32_84, %c8_i32_87 : i32
    %329 = tpu.assume_multiple %328, 8 : i32
    %330 = arith.index_cast %329 : i32 to index
    %c0_88 = arith.constant 0 : index
    %331 = vector.load %arg12[%330, %c0_88] : memref<64x32xf32, #tpu.memory_space<vmem>>, vector<8x32xf32>
    tpu.vector_store %arg12[%330, %c0_88], %327 {strides = array<i32>} : memref<64x32xf32, #tpu.memory_space<vmem>>, vector<8x32xf32>,
    %c3_i32_89 = arith.constant 3 : i32
    %cst_90 = arith.constant dense<0.000000e+00> : vector<8x128xf32>
    %332 = tpu.matmul %327, %1, %cst_90 {dimension_numbers = #tpu.dot_dimension_numbers<[1], [0], [0], [1], [0, 0, 1, 1], [], []>} : vector<8x32xf32>, vector<32x128xf32>, vector<8x128xf32> -> vector<8x128xf32>
    %333 = arith.addf %266, %332 : vector<8x128xf32>
    %334 = arith.negf %333 : vector<8x128xf32>
    %335 = math.exp %334 : vector<8x128xf32>
    %cst_91 = arith.constant 1.000000e+00 : f32
    %336 = vector.broadcast %cst_91 : f32 to vector<8x128xf32>
    %337 = arith.addf %336, %335 : vector<8x128xf32>
    %338 = arith.divf %336, %337 : vector<8x128xf32>
    %339 = math.tanh %333 : vector<8x128xf32>
    %340 = vector.extract_strided_slice %338 {offsets = [0, 0], sizes = [8, 32], strides = [1, 1]} : vector<8x128xf32> to vector<8x32xf32>
    %341 = vector.extract_strided_slice %338 {offsets = [0, 32], sizes = [8, 32], strides = [1, 1]} : vector<8x128xf32> to vector<8x32xf32>
    %342 = vector.extract_strided_slice %339 {offsets = [0, 64], sizes = [8, 32], strides = [1, 1]} : vector<8x128xf32> to vector<8x32xf32>
    %343 = vector.extract_strided_slice %338 {offsets = [0, 96], sizes = [8, 32], strides = [1, 1]} : vector<8x128xf32> to vector<8x32xf32>
    %344 = arith.mulf %341, %325 : vector<8x32xf32>
    %345 = arith.mulf %340, %342 : vector<8x32xf32>
    %346 = arith.addf %344, %345 : vector<8x32xf32>
    %347 = math.tanh %346 : vector<8x32xf32>
    %348 = arith.mulf %343, %347 : vector<8x32xf32>
    %c8_i32_92 = arith.constant 8 : i32
    %349 = arith.muli %c3_i32_89, %c8_i32_92 : i32
    %350 = tpu.assume_multiple %349, 8 : i32
    %351 = arith.index_cast %350 : i32 to index
    %c0_93 = arith.constant 0 : index
    %352 = vector.load %arg12[%351, %c0_93] : memref<64x32xf32, #tpu.memory_space<vmem>>, vector<8x32xf32>
    tpu.vector_store %arg12[%351, %c0_93], %348 {strides = array<i32>} : memref<64x32xf32, #tpu.memory_space<vmem>>, vector<8x32xf32>,
    %c4_i32_94 = arith.constant 4 : i32
    %cst_95 = arith.constant dense<0.000000e+00> : vector<8x128xf32>
    %353 = tpu.matmul %348, %1, %cst_95 {dimension_numbers = #tpu.dot_dimension_numbers<[1], [0], [0], [1], [0, 0, 1, 1], [], []>} : vector<8x32xf32>, vector<32x128xf32>, vector<8x128xf32> -> vector<8x128xf32>
    %354 = arith.addf %266, %353 : vector<8x128xf32>
    %355 = arith.negf %354 : vector<8x128xf32>
    %356 = math.exp %355 : vector<8x128xf32>
    %cst_96 = arith.constant 1.000000e+00 : f32
    %357 = vector.broadcast %cst_96 : f32 to vector<8x128xf32>
    %358 = arith.addf %357, %356 : vector<8x128xf32>
    %359 = arith.divf %357, %358 : vector<8x128xf32>
    %360 = math.tanh %354 : vector<8x128xf32>
    %361 = vector.extract_strided_slice %359 {offsets = [0, 0], sizes = [8, 32], strides = [1, 1]} : vector<8x128xf32> to vector<8x32xf32>
    %362 = vector.extract_strided_slice %359 {offsets = [0, 32], sizes = [8, 32], strides = [1, 1]} : vector<8x128xf32> to vector<8x32xf32>
    %363 = vector.extract_strided_slice %360 {offsets = [0, 64], sizes = [8, 32], strides = [1, 1]} : vector<8x128xf32> to vector<8x32xf32>
    %364 = vector.extract_strided_slice %359 {offsets = [0, 96], sizes = [8, 32], strides = [1, 1]} : vector<8x128xf32> to vector<8x32xf32>
    %365 = arith.mulf %362, %346 : vector<8x32xf32>
    %366 = arith.mulf %361, %363 : vector<8x32xf32>
    %367 = arith.addf %365, %366 : vector<8x32xf32>
    %368 = math.tanh %367 : vector<8x32xf32>
    %369 = arith.mulf %364, %368 : vector<8x32xf32>
    %c8_i32_97 = arith.constant 8 : i32
    %370 = arith.muli %c4_i32_94, %c8_i32_97 : i32
    %371 = tpu.assume_multiple %370, 8 : i32
    %372 = arith.index_cast %371 : i32 to index
    %c0_98 = arith.constant 0 : index
    %373 = vector.load %arg12[%372, %c0_98] : memref<64x32xf32, #tpu.memory_space<vmem>>, vector<8x32xf32>
    tpu.vector_store %arg12[%372, %c0_98], %369 {strides = array<i32>} : memref<64x32xf32, #tpu.memory_space<vmem>>, vector<8x32xf32>,
    %c5_i32_99 = arith.constant 5 : i32
    %cst_100 = arith.constant dense<0.000000e+00> : vector<8x128xf32>
    %374 = tpu.matmul %369, %1, %cst_100 {dimension_numbers = #tpu.dot_dimension_numbers<[1], [0], [0], [1], [0, 0, 1, 1], [], []>} : vector<8x32xf32>, vector<32x128xf32>, vector<8x128xf32> -> vector<8x128xf32>
    %375 = arith.addf %266, %374 : vector<8x128xf32>
    %376 = arith.negf %375 : vector<8x128xf32>
    %377 = math.exp %376 : vector<8x128xf32>
    %cst_101 = arith.constant 1.000000e+00 : f32
    %378 = vector.broadcast %cst_101 : f32 to vector<8x128xf32>
    %379 = arith.addf %378, %377 : vector<8x128xf32>
    %380 = arith.divf %378, %379 : vector<8x128xf32>
    %381 = math.tanh %375 : vector<8x128xf32>
    %382 = vector.extract_strided_slice %380 {offsets = [0, 0], sizes = [8, 32], strides = [1, 1]} : vector<8x128xf32> to vector<8x32xf32>
    %383 = vector.extract_strided_slice %380 {offsets = [0, 32], sizes = [8, 32], strides = [1, 1]} : vector<8x128xf32> to vector<8x32xf32>
    %384 = vector.extract_strided_slice %381 {offsets = [0, 64], sizes = [8, 32], strides = [1, 1]} : vector<8x128xf32> to vector<8x32xf32>
    %385 = vector.extract_strided_slice %380 {offsets = [0, 96], sizes = [8, 32], strides = [1, 1]} : vector<8x128xf32> to vector<8x32xf32>
    %386 = arith.mulf %383, %367 : vector<8x32xf32>
    %387 = arith.mulf %382, %384 : vector<8x32xf32>
    %388 = arith.addf %386, %387 : vector<8x32xf32>
    %389 = math.tanh %388 : vector<8x32xf32>
    %390 = arith.mulf %385, %389 : vector<8x32xf32>
    %c8_i32_102 = arith.constant 8 : i32
    %391 = arith.muli %c5_i32_99, %c8_i32_102 : i32
    %392 = tpu.assume_multiple %391, 8 : i32
    %393 = arith.index_cast %392 : i32 to index
    %c0_103 = arith.constant 0 : index
    %394 = vector.load %arg12[%393, %c0_103] : memref<64x32xf32, #tpu.memory_space<vmem>>, vector<8x32xf32>
    tpu.vector_store %arg12[%393, %c0_103], %390 {strides = array<i32>} : memref<64x32xf32, #tpu.memory_space<vmem>>, vector<8x32xf32>,
    %c6_i32_104 = arith.constant 6 : i32
    %cst_105 = arith.constant dense<0.000000e+00> : vector<8x128xf32>
    %395 = tpu.matmul %390, %1, %cst_105 {dimension_numbers = #tpu.dot_dimension_numbers<[1], [0], [0], [1], [0, 0, 1, 1], [], []>} : vector<8x32xf32>, vector<32x128xf32>, vector<8x128xf32> -> vector<8x128xf32>
    %396 = arith.addf %266, %395 : vector<8x128xf32>
    %397 = arith.negf %396 : vector<8x128xf32>
    %398 = math.exp %397 : vector<8x128xf32>
    %cst_106 = arith.constant 1.000000e+00 : f32
    %399 = vector.broadcast %cst_106 : f32 to vector<8x128xf32>
    %400 = arith.addf %399, %398 : vector<8x128xf32>
    %401 = arith.divf %399, %400 : vector<8x128xf32>
    %402 = math.tanh %396 : vector<8x128xf32>
    %403 = vector.extract_strided_slice %401 {offsets = [0, 0], sizes = [8, 32], strides = [1, 1]} : vector<8x128xf32> to vector<8x32xf32>
    %404 = vector.extract_strided_slice %401 {offsets = [0, 32], sizes = [8, 32], strides = [1, 1]} : vector<8x128xf32> to vector<8x32xf32>
    %405 = vector.extract_strided_slice %402 {offsets = [0, 64], sizes = [8, 32], strides = [1, 1]} : vector<8x128xf32> to vector<8x32xf32>
    %406 = vector.extract_strided_slice %401 {offsets = [0, 96], sizes = [8, 32], strides = [1, 1]} : vector<8x128xf32> to vector<8x32xf32>
    %407 = arith.mulf %404, %388 : vector<8x32xf32>
    %408 = arith.mulf %403, %405 : vector<8x32xf32>
    %409 = arith.addf %407, %408 : vector<8x32xf32>
    %410 = math.tanh %409 : vector<8x32xf32>
    %411 = arith.mulf %406, %410 : vector<8x32xf32>
    %c8_i32_107 = arith.constant 8 : i32
    %412 = arith.muli %c6_i32_104, %c8_i32_107 : i32
    %413 = tpu.assume_multiple %412, 8 : i32
    %414 = arith.index_cast %413 : i32 to index
    %c0_108 = arith.constant 0 : index
    %415 = vector.load %arg12[%414, %c0_108] : memref<64x32xf32, #tpu.memory_space<vmem>>, vector<8x32xf32>
    tpu.vector_store %arg12[%414, %c0_108], %411 {strides = array<i32>} : memref<64x32xf32, #tpu.memory_space<vmem>>, vector<8x32xf32>,
    %c7_i32_109 = arith.constant 7 : i32
    %cst_110 = arith.constant dense<0.000000e+00> : vector<8x128xf32>
    %416 = tpu.matmul %411, %1, %cst_110 {dimension_numbers = #tpu.dot_dimension_numbers<[1], [0], [0], [1], [0, 0, 1, 1], [], []>} : vector<8x32xf32>, vector<32x128xf32>, vector<8x128xf32> -> vector<8x128xf32>
    %417 = arith.addf %266, %416 : vector<8x128xf32>
    %418 = arith.negf %417 : vector<8x128xf32>
    %419 = math.exp %418 : vector<8x128xf32>
    %cst_111 = arith.constant 1.000000e+00 : f32
    %420 = vector.broadcast %cst_111 : f32 to vector<8x128xf32>
    %421 = arith.addf %420, %419 : vector<8x128xf32>
    %422 = arith.divf %420, %421 : vector<8x128xf32>
    %423 = math.tanh %417 : vector<8x128xf32>
    %424 = vector.extract_strided_slice %422 {offsets = [0, 0], sizes = [8, 32], strides = [1, 1]} : vector<8x128xf32> to vector<8x32xf32>
    %425 = vector.extract_strided_slice %422 {offsets = [0, 32], sizes = [8, 32], strides = [1, 1]} : vector<8x128xf32> to vector<8x32xf32>
    %426 = vector.extract_strided_slice %423 {offsets = [0, 64], sizes = [8, 32], strides = [1, 1]} : vector<8x128xf32> to vector<8x32xf32>
    %427 = vector.extract_strided_slice %422 {offsets = [0, 96], sizes = [8, 32], strides = [1, 1]} : vector<8x128xf32> to vector<8x32xf32>
    %428 = arith.mulf %425, %409 : vector<8x32xf32>
    %429 = arith.mulf %424, %426 : vector<8x32xf32>
    %430 = arith.addf %428, %429 : vector<8x32xf32>
    %431 = math.tanh %430 : vector<8x32xf32>
    %432 = arith.mulf %427, %431 : vector<8x32xf32>
    %c8_i32_112 = arith.constant 8 : i32
    %433 = arith.muli %c7_i32_109, %c8_i32_112 : i32
    %434 = tpu.assume_multiple %433, 8 : i32
    %435 = arith.index_cast %434 : i32 to index
    %c0_113 = arith.constant 0 : index
    %436 = vector.load %arg12[%435, %c0_113] : memref<64x32xf32, #tpu.memory_space<vmem>>, vector<8x32xf32>
    tpu.vector_store %arg12[%435, %c0_113], %432 {strides = array<i32>} : memref<64x32xf32, #tpu.memory_space<vmem>>, vector<8x32xf32>,
    %c8_i32_114 = arith.constant 8 : i32
    %c0_115 = arith.constant 0 : index
    %c0_116 = arith.constant 0 : index
    %437 = vector.load %arg12[%c0_115, %c0_116] : memref<64x32xf32, #tpu.memory_space<vmem>>, vector<64x32xf32>
    %cst_117 = arith.constant dense<0.000000e+00> : vector<64x32xf32>
    %438 = tpu.matmul %437, %2, %cst_117 {dimension_numbers = #tpu.dot_dimension_numbers<[1], [0], [0], [1], [0, 0, 1, 1], [], []>} : vector<64x32xf32>, vector<32x32xf32>, vector<64x32xf32> -> vector<64x32xf32>
    %439 = vector.broadcast %3 : vector<1x32xf32> to vector<64x32xf32>
    %440 = arith.addf %438, %439 : vector<64x32xf32>
    %c0_118 = arith.constant 0 : index
    %c0_119 = arith.constant 0 : index
    %441 = vector.load %arg9[%c0_118, %c0_119] : memref<64x32xf32, #tpu.memory_space<vmem>>, vector<64x32xf32>
    tpu.vector_store %arg9[%c0_118, %c0_119], %440 {strides = array<i32>} : memref<64x32xf32, #tpu.memory_space<vmem>>, vector<64x32xf32>,
    return
  }
}

</mosaic_0001>

<bundles_post_ra>
// kernel: _lambda_.1
= control target key start
LH: loop header
LB: loop body
LE: loop exit
PB: predicated region body
PF: predicated region fallthrough
CT: control target
= control target key end

     0   :  { %16 = vsyncpa [#allocation5], 0  ;;  %s4975_s0 = inlined_call_operand.vmem [shape: f32[64,32], index: 0, kind: input, shape index: {}]   ;;  %s4976_s1 = inlined_call_operand.vmem [shape: f32[32,512], index: 1, kind: input, shape index: {}]   ;;  %s4977_s2 = inlined_call_operand.hbm [shape: f32[128,512], index: 2, kind: input, shape index: {}]   ;;  %s4978_s3 = inlined_call_operand.vmem [shape: f32[1,512], index: 3, kind: input, shape index: {}]   ;;  %s4979_s4 = inlined_call_operand.hbm [shape: f32[128,128], index: 4, kind: input, shape index: {}]   ;;  %s4980_s5 = inlined_call_operand.vmem [shape: f32[32,128], index: 5, kind: input, shape index: {}]   ;;  %s4981_s6 = inlined_call_operand.vmem [shape: f32[1,128], index: 6, kind: input, shape index: {}]   ;;  %s4982_s7 = inlined_call_operand.vmem [shape: f32[32,32], index: 7, kind: input, shape index: {}]   ;;  %s4983_s8 = inlined_call_operand.vmem [shape: f32[1,32], index: 8, kind: input, shape index: {}]   ;;  %s4984_s9 = inlined_call_operand.vmem [shape: f32[64,32], index: 9, kind: output, shape index: {0}]   ;;  %s4985_s10 = inlined_call_operand.vmem [shape: f32[8,128], index: 10, kind: output, shape index: {1}]  }
   0x1   :  { %17 = vsyncpa [#allocation7], 0  ;;  %s4165_s13 = smov [#allocation4]   ;;  %s4117_s17 = scalar_lea.hbm %s4977_s2, 8192 }
   0x2   :  { %s27_s14 = sshll.u32 %s4165_s13, 4  ;;  %p4118_p0 = scmp.ne.s32.totalorder %s4977_s2, %s4117_s17  ;;  %s28_s14 = int_to_ptr.vmem [resolvable:$true] %s27_s14 }
   0x3   :  { %p4121_p1 = scmp.lt.u32.totalorder %s4117_s17, %s4977_s2 }
   0x5   :  { %p4123_p2 = pnand %p4121_p1, %p4118_p0 }
   0x7   :  { %4126 = shalt.err (!%p4123_p2)
}
   0x8   :  { %s4127_s22 = scalar_lea.vmem %s28_s14, 8192  ;;  %p4132_p4 = scmp.lt.s32.totalorder %s28_s14, %s28_s14 }
   0x9   :  { %p4128_p3 = scmp.ne.s32.totalorder %s28_s14, %s4127_s22  ;;  %p4133_p5 = scmp.lt.s32.totalorder %s4127_s22, %s4127_s22 }
   0xb   :  { %p4134_p6 = por %p4133_p5, %p4132_p4 }
   0xd   :  { %p4135_p7 = pnand %p4134_p6, %p4128_p3 }
   0xf   :  { %4138 = shalt.err (!%p4135_p7)
}
  0x10   :  { %s4166_s23 = smov 512   ;;  %s4167_s24 = smov 32  }
  0x11   :  { %33 = dma.hbm_to_vmem [thread:$0]  %s4977_s2, 8192, %s28_s14, [#allocation5], %s4166_s23, %s4166_s23, %s4167_s24  }
  0x12   :  { %s4168_s27 = smov [#allocation6]   ;;  %s4139_s11 = scalar_lea.hbm %s4979_s4, 2048 }
  0x13   :  { %s41_s28 = sshll.u32 %s4168_s27, 4  ;;  %p4140_p8 = scmp.ne.s32.totalorder %s4979_s4, %s4139_s11  ;;  %s42_s28 = int_to_ptr.vmem [resolvable:$true] %s41_s28 }
  0x14   :  { %p4143_p9 = scmp.lt.u32.totalorder %s4139_s11, %s4979_s4 }
  0x16   :  { %p4145_p10 = pnand %p4143_p9, %p4140_p8 }
  0x18   :  { %4148 = shalt.err (!%p4145_p10)
}
  0x19   :  { %s4149_s17 = scalar_lea.vmem %s42_s28, 2048  ;;  %p4154_p12 = scmp.lt.s32.totalorder %s42_s28, %s42_s28 }
  0x1a   :  { %p4150_p11 = scmp.ne.s32.totalorder %s42_s28, %s4149_s17  ;;  %p4155_p13 = scmp.lt.s32.totalorder %s4149_s17, %s4149_s17 }
  0x1c   :  { %p4156_p0 = por %p4155_p13, %p4154_p12 }
  0x1e   :  { %p4157_p1 = pnand %p4156_p0, %p4150_p11 }
  0x20   :  { %4160 = shalt.err (!%p4157_p1)
}
  0x21   :  { %s4169_s2 = smov 128   ;;  %s4170_s14 = smov 8  }
  0x22   :  { %47 = dma.hbm_to_vmem [thread:$0]  %s4979_s4, 2048, %s42_s28, [#allocation7], %s4169_s2, %s4169_s2, %s4170_s14  }
  0x23   :  { %4161 = dma.done.wait [#allocation5], 8192  }
  0x24   :  { %4162 = vsyncadd [#allocation5], 4294959104 }
  0x25   :  { %4163 = dma.done.wait [#allocation7], 2048  }
  0x26   :  { %4164 = vsyncadd [#allocation7], 4294965248  ;;  %v4171_v0 = vmov 0.0   ;;  %v144_v1 = vld [vmem:[%s4976_s1 + $0x8] sm:$0xff]  ;;  %v146_v3 = vld [vmem:[%s4976_s1 + $0x18] sm:$0xff]  ;;  %vm181_vm0 = vcmask 261120  }
  0x27   :  { %270 = vmatprep.mubr.f32.mxu0 %v4171_v0  ;;  %383 = vmatprep.mubr.f32.mxu1 %v4171_v0  ;;  %v148_v2 = vld [vmem:[%s4976_s1 + $0x28] sm:$0xff]  ;;  %v150_v5 = vld [vmem:[%s4976_s1 + $0x38] sm:$0xff]  ;;  %v143_v6 = vld [vmem:[%s4976_s1] sm:$0xff]  ;;  %vm4173_vm1 = vmmov 0  }
  0x28   :  { %v3243_v4 = vpack.c.bf16 %v148_v2, %v144_v1  ;;  %v147_v7 = vld [vmem:[%s4976_s1 + $0x20] sm:$0xff]  ;;  %v3251_v8 = vpack.c.bf16 %v150_v5, %v146_v3  ;;  %v145_v10 = vld [vmem:[%s4976_s1 + $0x10] sm:$0xff]  ;;  %v152_v12 = vld [vmem:[%s4976_s1 + $0x48] sm:$0xff] }
  0x29   :  { %v3245_v9 = vpack.c.bf16 %v147_v7, %v143_v6  ;;  %v149_v11 = vld [vmem:[%s4976_s1 + $0x30] sm:$0xff]  ;;  %v156_v14 = vld [vmem:[%s4976_s1 + $0x68] sm:$0xff]  ;;  %v154_v15 = vld [vmem:[%s4976_s1 + $0x58] sm:$0xff] }
  0x2a   :  { %3244 = vmatprep.subr.bf16.mxu0 %v3243_v4  ;;  %v3253_v13 = vpack.c.bf16 %v149_v11, %v145_v10  ;;  %v158_v16 = vld [vmem:[%s4976_s1 + $0x78] sm:$0xff]  ;;  %3252 = vmatprep.subr.bf16.mxu1 %v3251_v8  ;;  %v3247_v17 = vpack.c.bf16 %v156_v14, %v152_v12  ;;  %v151_v19 = vld [vmem:[%s4976_s1 + $0x40] sm:$0xff]  ;;  %v153_v21 = vld [vmem:[%s4976_s1 + $0x50] sm:$0xff] }
  0x2b   :  { %3246 = vmatpush1.bf16.msra.mxu0 %v3245_v9  ;;  %v3255_v18 = vpack.c.bf16 %v158_v16, %v154_v15  ;;  %v155_v20 = vld [vmem:[%s4976_s1 + $0x60] sm:$0xff]  ;;  %v157_v23 = vld [vmem:[%s4976_s1 + $0x70] sm:$0xff]  ;;  %v63_v24 = vld [vmem:[#allocation4 + $0x8] sm:$0xff] }
  0x2c   :  { %3254 = vmatpush1.bf16.msra.mxu1 %v3253_v13  ;;  %v3249_v22 = vpack.c.bf16 %v155_v20, %v151_v19  ;;  %3248 = vmatprep.subr.bf16.mxu0 %v3247_v17  ;;  %v3257_v25 = vpack.c.bf16 %v157_v23, %v153_v21  ;;  %v67_v26 = vld [vmem:[#allocation4 + $0x28] sm:$0xff]  ;;  %v65_v27 = vld [vmem:[#allocation4 + $0x18] sm:$0xff]  ;;  %v62_v31 = vld [vmem:[#allocation4] sm:$0xff] }
  0x2d   :  { %3256 = vmatprep.subr.bf16.mxu1 %v3255_v18  ;;  %v69_v28 = vld [vmem:[#allocation4 + $0x38] sm:$0xff]  ;;  %v4305_v29 = vpack.c.bf16 %v67_v26, %v63_v24  ;;  %v66_v32 = vld [vmem:[#allocation4 + $0x20] sm:$0xff]  ;;  %v64_v33 = vld [vmem:[#allocation4 + $0x10] sm:$0xff] }
  0x2e   :  { %v4307_v30 = vpack.c.bf16 %v69_v28, %v65_v27  ;;  %v135_v34 = vld [vmem:[%s4975_s0] sm:$0xff]  ;;  %v4312_v35 = vpack.c.bf16 %v66_v32, %v62_v31  ;;  %v68_v36 = vld [vmem:[#allocation4 + $0x30] sm:$0xff]  ;;  %v71_v37 = vld [vmem:[#allocation4 + $0x48] sm:$0xff] }
  0x2f   :  { %3250 = vmatpush1.bf16.msra.mxu0 %v3249_v22  ;;  %v4315_v38 = vpack.c.bf16 %v68_v36, %v64_v33  ;;  %v75_v39 = vld [vmem:[#allocation4 + $0x68] sm:$0xff]  ;;  %v73_v40 = vld [vmem:[#allocation4 + $0x58] sm:$0xff]  ;;  %v70_v43 = vld [vmem:[#allocation4 + $0x40] sm:$0xff] }
  0x30   :  { %3258 = vmatpush1.bf16.msra.mxu1 %v3257_v25  ;;  %3260 = vmatprep.subr.bf16.mxu0 %v4305_v29  ;;  %v77_v41 = vld [vmem:[#allocation4 + $0x78] sm:$0xff]  ;;  %v4318_v42 = vpack.c.bf16 %v75_v39, %v71_v37  ;;  %v74_v44 = vld [vmem:[#allocation4 + $0x60] sm:$0xff]  ;;  %v72_v45 = vld [vmem:[#allocation4 + $0x50] sm:$0xff] }
  0x31   :  { %3292 = vmatprep.subr.bf16.mxu1 %v4307_v30  ;;  %v136_v46 = vld [vmem:[%s4975_s0 + $0x8] sm:$0xff]  ;;  %v4324_v47 = vpack.c.bf16 %v77_v41, %v73_v40  ;;  %v76_v48 = vld [vmem:[#allocation4 + $0x70] sm:$0xff]  ;;  %v4328_v50 = vpack.c.bf16 %v74_v44, %v70_v43  ;;  %v81_v52 = vld [vmem:[#allocation4 + $0x98] sm:$0xff] }
  0x32   :  { %2966 = vmatmul.mubr.msk.f32.vlgmr.msra.gmra.mrb[0].mxu0 %vm181_vm0, %v135_v34  ;;  %v79_v49 = vld [vmem:[#allocation4 + $0x88] sm:$0xff]  ;;  %v85_v53 = vld [vmem:[#allocation4 + $0xb8] sm:$0xff]  ;;  %v4332_v54 = vpack.c.bf16 %v76_v48, %v72_v45  ;;  %v78_v55 = vld [vmem:[#allocation4 + $0x80] sm:$0xff] }
  0x33   :  { %2974 = vmatmul.mubr.msk.f32.vlgmr.msra.gmra.mrb[0].mxu1 %vm181_vm0, %v135_v34  ;;  %3262 = vmatpush1.bf16.msra.mxu0 %v4312_v35  ;;  %v83_v51 = vld [vmem:[#allocation4 + $0xa8] sm:$0xff]  ;;  %v82_v56 = vld [vmem:[#allocation4 + $0xa0] sm:$0xff]  ;;  %v80_v58 = vld [vmem:[#allocation4 + $0x90] sm:$0xff]  ;;  %v4340_v60 = vpack.c.bf16 %v85_v53, %v81_v52 }
  0x34   :  { %3294 = vmatpush1.bf16.msra.mxu1 %v4315_v38  ;;  %276 = vmatprep.mubr.f32.mxu0 %v4171_v0  ;;  %v4336_v57 = vpack.c.bf16 %v83_v51, %v79_v49  ;;  %v84_v59 = vld [vmem:[#allocation4 + $0xb0] sm:$0xff]  ;;  %v87_v61 = vld [vmem:[#allocation4 + $0xc8] sm:$0xff]  ;;  %v4347_v1 = vpack.c.bf16 %v82_v56, %v78_v55  ;;  %v89_v2 = vld [vmem:[#allocation4 + $0xd8] sm:$0xff] }
  0x35   :  { %389 = vmatprep.mubr.f32.mxu1 %v4171_v0  ;;  %3264 = vmatprep.subr.bf16.mxu0 %v4318_v42  ;;  %v91_v62 = vld [vmem:[#allocation4 + $0xe8] sm:$0xff]  ;;  %v137_v63 = vld [vmem:[%s4975_s0 + $0x10] sm:$0xff]  ;;  %v93_v3 = vld [vmem:[#allocation4 + $0xf8] sm:$0xff]  ;;  %v4351_v4 = vpack.c.bf16 %v84_v59, %v80_v58 }
  0x36   :  { %2967 = vmatmul.mubr.msk.f32.gmra.mrb[2].mxu0 %vm181_vm0, %v136_v46  ;;  %3296 = vmatprep.subr.bf16.mxu1 %v4324_v47  ;;  %v86_v5 = vld [vmem:[#allocation4 + $0xc0] sm:$0xff]  ;;  %v4355_v7 = vpack.c.bf16 %v91_v62, %v87_v61  ;;  %v88_v8 = vld [vmem:[#allocation4 + $0xd0] sm:$0xff]  ;;  %v4359_v10 = vpack.c.bf16 %v93_v3, %v89_v2  ;;  %v95_v11 = vld [vmem:[#allocation4 + $0x108] sm:$0xff] }
  0x37   :  { %2975 = vmatmul.mubr.msk.f32.gmra.mrb[2].mxu1 %vm181_vm0, %v136_v46  ;;  %3266 = vmatpush1.bf16.msra.mxu0 %v4328_v50  ;;  %v90_v6 = vld [vmem:[#allocation4 + $0xe0] sm:$0xff]  ;;  %v92_v9 = vld [vmem:[#allocation4 + $0xf0] sm:$0xff]  ;;  %v99_v12 = vld [vmem:[#allocation4 + $0x128] sm:$0xff] }
  0x38   :  { %3298 = vmatpush1.bf16.msra.mxu1 %v4332_v54  ;;  %282 = vmatprep.mubr.f32.mxu0 %v4171_v0  ;;  %v138_v13 = vld [vmem:[%s4975_s0 + $0x18] sm:$0xff]  ;;  %v4366_v14 = vpack.c.bf16 %v90_v6, %v86_v5  ;;  %v4370_v17 = vpack.c.bf16 %v92_v9, %v88_v8  ;;  %v94_v18 = vld [vmem:[#allocation4 + $0x100] sm:$0xff]  ;;  %v4374_v20 = vpack.c.bf16 %v99_v12, %v95_v11  ;;  %v96_v21 = vld [vmem:[#allocation4 + $0x110] sm:$0xff] }
  0x39   :  { %395 = vmatprep.mubr.f32.mxu1 %v4171_v0  ;;  %3268 = vmatprep.subr.bf16.mxu0 %v4336_v57  ;;  %v97_v15 = vld [vmem:[#allocation4 + $0x118] sm:$0xff]  ;;  %v98_v19 = vld [vmem:[#allocation4 + $0x120] sm:$0xff]  ;;  %v100_v22 = vld [vmem:[#allocation4 + $0x130] sm:$0xff] }
  0x3a   :  { %2968 = vmatmul.mubr.msk.f32.gmra.mrb[4].mxu0 %vm181_vm0, %v137_v63  ;;  %3300 = vmatprep.subr.bf16.mxu1 %v4340_v60  ;;  %v101_v16 = vld [vmem:[#allocation4 + $0x138] sm:$0xff]  ;;  %v103_v24 = vld [vmem:[#allocation4 + $0x148] sm:$0xff]  ;;  %v139_v26 = vld [vmem:[%s4975_s0 + $0x20] sm:$0xff]  ;;  %v4385_v27 = vpack.c.bf16 %v98_v19, %v94_v18  ;;  %v4389_v32 = vpack.c.bf16 %v100_v22, %v96_v21  ;;  %v161_v19 = vlaneseq }
  0x3b   :  { %2976 = vmatmul.mubr.msk.f32.gmra.mrb[4].mxu1 %vm181_vm0, %v137_v63  ;;  %3270 = vmatpush1.bf16.msra.mxu0 %v4347_v1  ;;  %v4378_v23 = vpack.c.bf16 %v101_v16, %v97_v15  ;;  %v107_v25 = vld [vmem:[#allocation4 + $0x168] sm:$0xff]  ;;  %v105_v28 = vld [vmem:[#allocation4 + $0x158] sm:$0xff]  ;;  %v102_v33 = vld [vmem:[#allocation4 + $0x140] sm:$0xff] }
  0x3c   :  { %3302 = vmatpush1.bf16.msra.mxu1 %v4351_v4  ;;  %288 = vmatprep.mubr.f32.mxu0 %v4171_v0  ;;  %v109_v31 = vld [vmem:[#allocation4 + $0x178] sm:$0xff]  ;;  %v106_v34 = vld [vmem:[#allocation4 + $0x160] sm:$0xff]  ;;  %v4393_v36 = vpack.c.bf16 %v107_v25, %v103_v24  ;;  %v104_v37 = vld [vmem:[#allocation4 + $0x150] sm:$0xff]  ;;  %v162_v21 = vshrl.u32 %v161_v19, 7 }
  0x3d   :  { %401 = vmatprep.mubr.f32.mxu1 %v4171_v0  ;;  %3272 = vmatprep.subr.bf16.mxu0 %v4355_v7  ;;  %v108_v39 = vld [vmem:[#allocation4 + $0x170] sm:$0xff]  ;;  %v4397_v40 = vpack.c.bf16 %v109_v31, %v105_v28  ;;  %v111_v41 = vld [vmem:[#allocation4 + $0x188] sm:$0xff]  ;;  %v4404_v45 = vpack.c.bf16 %v106_v34, %v102_v33  ;;  %v113_v46 = vld [vmem:[#allocation4 + $0x198] sm:$0xff] }
  0x3e   :  { %2969 = vmatmul.mubr.msk.f32.gmra.mrb[6].mxu0 %vm181_vm0, %v138_v13  ;;  %3304 = vmatprep.subr.bf16.mxu1 %v4359_v10  ;;  %v115_v43 = vld [vmem:[#allocation4 + $0x1a8] sm:$0xff]  ;;  %v117_v48 = vld [vmem:[#allocation4 + $0x1b8] sm:$0xff]  ;;  %v4408_v49 = vpack.c.bf16 %v108_v39, %v104_v37  ;;  %v110_v51 = vld [vmem:[#allocation4 + $0x180] sm:$0xff]  ;;  %v163_v22 = vsub.s32 0, %v162_v21  ;;  %v167_v25 = vsub.s32 1, %v162_v21  ;;  %v175_v33 = vsub.s32 3, %v162_v21 }
  0x3f   :  { %2977 = vmatmul.mubr.msk.f32.gmra.mrb[6].mxu1 %vm181_vm0, %v138_v13  ;;  %3274 = vmatpush1.bf16.msra.mxu0 %v4366_v14  ;;  %v140_v44 = vld [vmem:[%s4975_s0 + $0x28] sm:$0xff]  ;;  %v114_v52 = vld [vmem:[#allocation4 + $0x1a0] sm:$0xff]  ;;  %v4412_v53 = vpack.c.bf16 %v115_v43, %v111_v41  ;;  %v112_v55 = vld [vmem:[#allocation4 + $0x190] sm:$0xff]  ;;  %v4416_v58 = vpack.c.bf16 %v117_v48, %v113_v46 }
  0x40   :  { %3306 = vmatpush1.bf16.msra.mxu1 %v4370_v17  ;;  %294 = vmatprep.mubr.f32.mxu0 %v4171_v0  ;;  %v116_v56 = vld [vmem:[#allocation4 + $0x1b0] sm:$0xff]  ;;  %v119_v59 = vld [vmem:[#allocation4 + $0x1c8] sm:$0xff]  ;;  %v4423_v63 = vpack.c.bf16 %v114_v52, %v110_v51  ;;  %v121_v2 = vld [vmem:[#allocation4 + $0x1d8] sm:$0xff]  ;;  %v171_v51 = vsub.s32 2, %v162_v21 }
  0x41   :  { %407 = vmatprep.mubr.f32.mxu1 %v4171_v0  ;;  %3276 = vmatprep.subr.bf16.mxu0 %v4374_v20  ;;  %v123_v61 = vld [vmem:[#allocation4 + $0x1e8] sm:$0xff]  ;;  %v141_v62 = vld [vmem:[%s4975_s0 + $0x30] sm:$0xff]  ;;  %v125_v3 = vld [vmem:[#allocation4 + $0x1f8] sm:$0xff]  ;;  %v4427_v5 = vpack.c.bf16 %v116_v56, %v112_v55 }
  0x42   :  { %2970 = vmatmul.mubr.msk.f32.gmra.mrb[8].mxu0 %vm181_vm0, %v139_v26  ;;  %3308 = vmatprep.subr.bf16.mxu1 %v4378_v23  ;;  %v118_v6 = vld [vmem:[#allocation4 + $0x1c0] sm:$0xff]  ;;  %v4431_v9 = vpack.c.bf16 %v123_v61, %v119_v59  ;;  %v120_v11 = vld [vmem:[#allocation4 + $0x1d0] sm:$0xff]  ;;  %v4435_v13 = vpack.c.bf16 %v125_v3, %v121_v2  ;;  %v142_v15 = vld [vmem:[%s4975_s0 + $0x38] sm:$0xff] }
  0x43   :  { %2978 = vmatmul.mubr.msk.f32.gmra.mrb[8].mxu1 %vm181_vm0, %v139_v26  ;;  %3278 = vmatpush1.bf16.msra.mxu0 %v4385_v27  ;;  %v122_v8 = vld [vmem:[#allocation4 + $0x1e0] sm:$0xff]  ;;  %v124_v12 = vld [vmem:[#allocation4 + $0x1f0] sm:$0xff] }
  0x44   :  { %3310 = vmatpush1.bf16.msra.mxu1 %v4389_v32  ;;  %300 = vmatprep.mubr.f32.mxu0 %v4171_v0  ;;  %v4442_v16 = vpack.c.bf16 %v122_v8, %v118_v6  ;;  %v4446_v18 = vpack.c.bf16 %v124_v12, %v120_v11  ;;  %v159_v24 = vld [vmem:[%s4978_s3] sm:$0xf] }
  0x45   :  { %413 = vmatprep.mubr.f32.mxu1 %v4171_v0  ;;  %3280 = vmatprep.subr.bf16.mxu0 %v4393_v36  ;;  %v4498_v26 = vrot.slane %v159_v24, %v163_v22  ;;  %v4500_v28 = vrot.slane %v159_v24, %v167_v25  ;;  %v4504_v48 = vrot.slane %v159_v24, %v175_v33 }
  0x46   :  { %2971 = vmatmul.mubr.msk.f32.gmra.mrb[10].mxu0 %vm181_vm0, %v140_v44  ;;  %3312 = vmatprep.subr.bf16.mxu1 %v4397_v40  ;;  %v4507_v55 = vrot.slane %v159_v24, %v171_v51 }
  0x47   :  { %2979 = vmatmul.mubr.msk.f32.gmra.mrb[10].mxu1 %vm181_vm0, %v140_v44  ;;  %3282 = vmatpush1.bf16.msra.mxu0 %v4404_v45 }
  0x48   :  { %3314 = vmatpush1.bf16.msra.mxu1 %v4408_v49  ;;  %306 = vmatprep.mubr.f32.mxu0 %v4171_v0 }
  0x49   :  { %419 = vmatprep.mubr.f32.mxu1 %v4171_v0  ;;  %3284 = vmatprep.subr.bf16.mxu0 %v4412_v53 }
  0x4a   :  { %2972 = vmatmul.mubr.msk.f32.gmra.mrb[12].mxu0 %vm181_vm0, %v141_v62  ;;  %3316 = vmatprep.subr.bf16.mxu1 %v4416_v58 }
  0x4b   :  { %2980 = vmatmul.mubr.msk.f32.gmra.mrb[12].mxu1 %vm181_vm0, %v141_v62  ;;  %3286 = vmatpush1.bf16.msra.mxu0 %v4423_v63 }
  0x4c   :  { %3318 = vmatpush1.bf16.msra.mxu1 %v4427_v5  ;;  %312 = vmatprep.mubr.f32.mxu0 %v4171_v0 }
  0x4d   :  { %425 = vmatprep.mubr.f32.mxu1 %v4171_v0  ;;  %3288 = vmatprep.subr.bf16.mxu0 %v4431_v9 }
  0x4e   :  { %2973 = vmatmul.mubr.msk.f32.gmra.mrb[14].mxu0 %vm181_vm0, %v142_v15  ;;  %3320 = vmatprep.subr.bf16.mxu1 %v4435_v13 }
  0x4f   :  { %2981 = vmatmul.mubr.msk.f32.gmra.mrb[14].mxu1 %vm181_vm0, %v142_v15  ;;  %3290 = vmatpush1.bf16.msra.mxu0 %v4442_v16 }
  0x50   :  { %3322 = vmatpush1.bf16.msra.mxu1 %v4446_v18  ;;  %535 = vmatprep.mubr.f32.mxu0 %v4171_v0 }
  0x51   :  { %606 = vmatprep.mubr.f32.mxu1 %v4171_v0  ;;  %3324 = vmatprep.subr.bf16.mxu0 %v4305_v29 }
  0x52   :  { %536 = vmatmul.mubr.f32.vlgmr.msra.gmra.mrb[0].mxu0 %v4171_v0  ;;  %3356 = vmatprep.subr.bf16.mxu1 %v4307_v30 }
  0x53   :  { %607 = vmatmul.mubr.f32.vlgmr.msra.gmra.mrb[0].mxu1 %v4171_v0  ;;  %3326 = vmatpush1.bf16.msra.mxu0 %v4312_v35 }
  0x54   :  { %3358 = vmatpush1.bf16.msra.mxu1 %v4315_v38  ;;  %3328 = vmatprep.subr.bf16.mxu0 %v4318_v42 }
  0x55   :  { %3360 = vmatprep.subr.bf16.mxu1 %v4324_v47  ;;  %712 = vmatprep.mubr.f32.mxu0 %v4171_v0 }
  0x56   :  { %783 = vmatprep.mubr.f32.mxu1 %v4171_v0 }
  0x57   :  { %3330 = vmatpush1.bf16.msra.mxu0 %v4328_v50 }
  0x58   :  { %3362 = vmatpush1.bf16.msra.mxu1 %v4332_v54  ;;  %3332 = vmatprep.subr.bf16.mxu0 %v4336_v57 }
  0x59   :  { %3364 = vmatprep.subr.bf16.mxu1 %v4340_v60 }
  0x5b   :  { %3334 = vmatpush1.bf16.msra.mxu0 %v4347_v1 }
  0x5c   :  { %3366 = vmatpush1.bf16.msra.mxu1 %v4351_v4  ;;  %3336 = vmatprep.subr.bf16.mxu0 %v4355_v7 }
  0x5d   :  { %3368 = vmatprep.subr.bf16.mxu1 %v4359_v10 }
  0x5f   :  { %3338 = vmatpush1.bf16.msra.mxu0 %v4366_v14 }
  0x60   :  { %3370 = vmatpush1.bf16.msra.mxu1 %v4370_v17  ;;  %3340 = vmatprep.subr.bf16.mxu0 %v4374_v20 }
  0x61   :  { %3372 = vmatprep.subr.bf16.mxu1 %v4378_v23 }
  0x63   :  { %3342 = vmatpush1.bf16.msra.mxu0 %v4385_v27 }
  0x64   :  { %3374 = vmatpush1.bf16.msra.mxu1 %v4389_v32  ;;  %3344 = vmatprep.subr.bf16.mxu0 %v4393_v36 }
  0x65   :  { %3376 = vmatprep.subr.bf16.mxu1 %v4397_v40 }
  0x67   :  { %3346 = vmatpush1.bf16.msra.mxu0 %v4404_v45 }
  0x68   :  { %3378 = vmatpush1.bf16.msra.mxu1 %v4408_v49  ;;  %3348 = vmatprep.subr.bf16.mxu0 %v4412_v53 }
  0x69   :  { %3380 = vmatprep.subr.bf16.mxu1 %v4416_v58 }
  0x6b   :  { %3350 = vmatpush1.bf16.msra.mxu0 %v4423_v63 }
  0x6c   :  { %3382 = vmatpush1.bf16.msra.mxu1 %v4427_v5  ;;  %3352 = vmatprep.subr.bf16.mxu0 %v4431_v9 }
  0x6d   :  { %3384 = vmatprep.subr.bf16.mxu1 %v4435_v13 }
  0x6f   :  { %3354 = vmatpush1.bf16.msra.mxu0 %v4442_v16 }
  0x70   :  { %3386 = vmatpush1.bf16.msra.mxu1 %v4446_v18  ;;  %3388 = vmatprep.subr.bf16.mxu0 %v4305_v29 }
  0x71   :  { %3420 = vmatprep.subr.bf16.mxu1 %v4307_v30 }
 0x125   :  { %v537_v31 = vpop.f32.mrb[0].mxu0 }
 0x126   :  { %v3851_v34 = vadd.f32 %v537_v31, %v4498_v26  ;;  %v608_v37 = vpop.f32.mrb[0].mxu1  ;;  %v539_v39 = vpop.f32.mrb[1].mxu0 }
 0x127   :  { %v3852_v41 = vadd.f32 %v539_v39, %v4500_v28  ;;  %v610_v43 = vpop.f32.mrb[1].mxu1  ;;  %v3867_v59 = vadd.f32 %v608_v37, %v4507_v55 }
 0x128   :  { %v2982_v44 = vmul.f32 -1.442695, %v3851_v34  ;;  %v3868_v52 = vadd.f32 %v610_v43, %v4504_v48 }
 0x129   :  { %v2983_v46 = vmul.f32 -1.442695, %v3852_v41 }
 0x12a   :  { %3925 = vpow2.f32 %v2982_v44  ;;  %v2984_v56 = vmul.f32 -1.442695, %v3868_v52 }
 0x12b   :  { %3927 = vpow2.f32 %v2983_v46 }
 0x12c   :  { %3929 = vpow2.f32 %v2984_v56 }
 0x12d   :  { %3931 = vtanh.f32 %v3867_v59 }
 0x134   :  { %v3926_v61 = vpop.eup %3925 }
 0x135   :  { %v3928_v62 = vpop.eup %3927  ;;  %v620_v2 = vadd.f32 1.0, %v3926_v61 }
 0x136   :  { %v626_v3 = vadd.f32 1.0, %v3928_v62  ;;  %v3930_v6 = vpop.eup %3929 }
 0x137   :  { %3933 = vrcp.f32 %v620_v2  ;;  %v3932_v8 = vpop.eup %3931  ;;  %v633_v19 = vadd.f32 1.0, %v3930_v6 }
 0x138   :  { %3935 = vrcp.f32 %v626_v3 }
 0x139   :  { %3937 = vrcp.f32 %v633_v19 }
 0x141   :  { %v3934_v11 = vpop.eup %3933 }
 0x142   :  { %v3936_v12 = vpop.eup %3935  ;;  %v637_v15 = vmul.f32 %v3934_v11, %v3932_v8 }
 0x143   :  { %v636_v21 = vmul.f32 0.0, %v3936_v12  ;;  %v3938_v24 = vpop.eup %3937 }
 0x145   :  { %v4510_v22 = vadd.f32 %v637_v15, %v636_v21 }
 0x147   :  { %3939 = vtanh.f32 %v4510_v22 }
 0x151   :  { %v3940_v25 = vpop.eup %3939 }
 0x152   :  { %v640_v31 = vmul.f32 %v3940_v25, %v3938_v24 }
 0x154   :  { %713 = vmatmul.mubr.f32.vlgmr.msra.gmra.mrb[2].mxu0 %v640_v31  ;;  %784 = vmatmul.mubr.f32.vlgmr.msra.gmra.mrb[2].mxu1 %v640_v31 }
 0x155   :  { %3390 = vmatpush1.bf16.msra.mxu0 %v4312_v35  ;;  %3422 = vmatpush1.bf16.msra.mxu1 %v4315_v38 }
 0x156   :  { %3392 = vmatprep.subr.bf16.mxu0 %v4318_v42  ;;  %3424 = vmatprep.subr.bf16.mxu1 %v4324_v47 }
 0x157   :  { %889 = vmatprep.mubr.f32.mxu0 %v4171_v0  ;;  %960 = vmatprep.mubr.f32.mxu1 %v4171_v0 }
 0x159   :  { %3394 = vmatpush1.bf16.msra.mxu0 %v4328_v50  ;;  %3426 = vmatpush1.bf16.msra.mxu1 %v4332_v54 }
 0x15a   :  { %3396 = vmatprep.subr.bf16.mxu0 %v4336_v57  ;;  %3428 = vmatprep.subr.bf16.mxu1 %v4340_v60 }
 0x15d   :  { %3398 = vmatpush1.bf16.msra.mxu0 %v4347_v1  ;;  %3430 = vmatpush1.bf16.msra.mxu1 %v4351_v4 }
 0x15e   :  { %3400 = vmatprep.subr.bf16.mxu0 %v4355_v7  ;;  %3432 = vmatprep.subr.bf16.mxu1 %v4359_v10 }
 0x161   :  { %3402 = vmatpush1.bf16.msra.mxu0 %v4366_v14  ;;  %3434 = vmatpush1.bf16.msra.mxu1 %v4370_v17 }
 0x162   :  { %3404 = vmatprep.subr.bf16.mxu0 %v4374_v20  ;;  %3436 = vmatprep.subr.bf16.mxu1 %v4378_v23 }
 0x165   :  { %3406 = vmatpush1.bf16.msra.mxu0 %v4385_v27  ;;  %3438 = vmatpush1.bf16.msra.mxu1 %v4389_v32 }
 0x166   :  { %3408 = vmatprep.subr.bf16.mxu0 %v4393_v36  ;;  %3440 = vmatprep.subr.bf16.mxu1 %v4397_v40 }
 0x169   :  { %3410 = vmatpush1.bf16.msra.mxu0 %v4404_v45  ;;  %3442 = vmatpush1.bf16.msra.mxu1 %v4408_v49 }
 0x16a   :  { %3412 = vmatprep.subr.bf16.mxu0 %v4412_v53  ;;  %3444 = vmatprep.subr.bf16.mxu1 %v4416_v58 }
 0x16d   :  { %3414 = vmatpush1.bf16.msra.mxu0 %v4423_v63  ;;  %3446 = vmatpush1.bf16.msra.mxu1 %v4427_v5 }
 0x16e   :  { %3416 = vmatprep.subr.bf16.mxu0 %v4431_v9  ;;  %3448 = vmatprep.subr.bf16.mxu1 %v4435_v13 }
 0x171   :  { %3418 = vmatpush1.bf16.msra.mxu0 %v4442_v16  ;;  %3450 = vmatpush1.bf16.msra.mxu1 %v4446_v18 }
 0x172   :  { %3452 = vmatprep.subr.bf16.mxu0 %v4305_v29  ;;  %3484 = vmatprep.subr.bf16.mxu1 %v4307_v30 }
 0x227   :  { %v714_v33 = vpop.f32.mrb[2].mxu0  ;;  %v785_v34 = vpop.f32.mrb[2].mxu1 }
 0x228   :  { %v3853_v37 = vadd.f32 %v714_v33, %v4498_v26  ;;  %v716_v39 = vpop.f32.mrb[3].mxu0  ;;  %v787_v41 = vpop.f32.mrb[3].mxu1  ;;  %v3869_v56 = vadd.f32 %v785_v34, %v4507_v55 }
 0x229   :  { %v3854_v43 = vadd.f32 %v716_v39, %v4500_v28  ;;  %v3870_v51 = vadd.f32 %v787_v41, %v4504_v48 }
 0x22a   :  { %v2985_v44 = vmul.f32 -1.442695, %v3853_v37 }
 0x22b   :  { %v2986_v46 = vmul.f32 -1.442695, %v3854_v43  ;;  %v2987_v52 = vmul.f32 -1.442695, %v3870_v51 }
 0x22c   :  { %3941 = vpow2.f32 %v2985_v44 }
 0x22d   :  { %3943 = vpow2.f32 %v2986_v46 }
 0x22e   :  { %3945 = vpow2.f32 %v2987_v52 }
 0x22f   :  { %3947 = vtanh.f32 %v3869_v56 }
 0x236   :  { %v3942_v59 = vpop.eup %3941 }
 0x237   :  { %v3944_v61 = vpop.eup %3943  ;;  %v797_v62 = vadd.f32 1.0, %v3942_v59 }
 0x238   :  { %v803_v2 = vadd.f32 1.0, %v3944_v61  ;;  %v3946_v3 = vpop.eup %3945 }
 0x239   :  { %3949 = vrcp.f32 %v797_v62  ;;  %v3948_v6 = vpop.eup %3947  ;;  %v810_v15 = vadd.f32 1.0, %v3946_v3 }
 0x23a   :  { %3951 = vrcp.f32 %v803_v2 }
 0x23b   :  { %3953 = vrcp.f32 %v810_v15 }
 0x243   :  { %v3950_v8 = vpop.eup %3949 }
 0x244   :  { %v3952_v11 = vpop.eup %3951  ;;  %v814_v12 = vmul.f32 %v3950_v8, %v3948_v6 }
 0x245   :  { %v813_v19 = vmul.f32 %v3952_v11, %v4510_v22  ;;  %v3954_v24 = vpop.eup %3953 }
 0x247   :  { %v4552_v21 = vadd.f32 %v814_v12, %v813_v19 }
 0x249   :  { %3955 = vtanh.f32 %v4552_v21 }
 0x253   :  { %v3956_v25 = vpop.eup %3955 }
 0x254   :  { %v817_v31 = vmul.f32 %v3956_v25, %v3954_v24 }
 0x256   :  { %890 = vmatmul.mubr.f32.vlgmr.msra.gmra.mrb[4].mxu0 %v817_v31  ;;  %961 = vmatmul.mubr.f32.vlgmr.msra.gmra.mrb[4].mxu1 %v817_v31 }
 0x257   :  { %3454 = vmatpush1.bf16.msra.mxu0 %v4312_v35  ;;  %3486 = vmatpush1.bf16.msra.mxu1 %v4315_v38 }
 0x258   :  { %3456 = vmatprep.subr.bf16.mxu0 %v4318_v42  ;;  %3488 = vmatprep.subr.bf16.mxu1 %v4324_v47 }
 0x259   :  { %1066 = vmatprep.mubr.f32.mxu0 %v4171_v0  ;;  %1137 = vmatprep.mubr.f32.mxu1 %v4171_v0 }
 0x25b   :  { %3458 = vmatpush1.bf16.msra.mxu0 %v4328_v50  ;;  %3490 = vmatpush1.bf16.msra.mxu1 %v4332_v54 }
 0x25c   :  { %3460 = vmatprep.subr.bf16.mxu0 %v4336_v57  ;;  %3492 = vmatprep.subr.bf16.mxu1 %v4340_v60 }
 0x25f   :  { %3462 = vmatpush1.bf16.msra.mxu0 %v4347_v1  ;;  %3494 = vmatpush1.bf16.msra.mxu1 %v4351_v4 }
 0x260   :  { %3464 = vmatprep.subr.bf16.mxu0 %v4355_v7  ;;  %3496 = vmatprep.subr.bf16.mxu1 %v4359_v10 }
 0x263   :  { %3466 = vmatpush1.bf16.msra.mxu0 %v4366_v14  ;;  %3498 = vmatpush1.bf16.msra.mxu1 %v4370_v17 }
 0x264   :  { %3468 = vmatprep.subr.bf16.mxu0 %v4374_v20  ;;  %3500 = vmatprep.subr.bf16.mxu1 %v4378_v23 }
 0x267   :  { %3470 = vmatpush1.bf16.msra.mxu0 %v4385_v27  ;;  %3502 = vmatpush1.bf16.msra.mxu1 %v4389_v32 }
 0x268   :  { %3472 = vmatprep.subr.bf16.mxu0 %v4393_v36  ;;  %3504 = vmatprep.subr.bf16.mxu1 %v4397_v40 }
 0x26b   :  { %3474 = vmatpush1.bf16.msra.mxu0 %v4404_v45  ;;  %3506 = vmatpush1.bf16.msra.mxu1 %v4408_v49 }
 0x26c   :  { %3476 = vmatprep.subr.bf16.mxu0 %v4412_v53  ;;  %3508 = vmatprep.subr.bf16.mxu1 %v4416_v58 }
 0x26f   :  { %3478 = vmatpush1.bf16.msra.mxu0 %v4423_v63  ;;  %3510 = vmatpush1.bf16.msra.mxu1 %v4427_v5 }
 0x270   :  { %3480 = vmatprep.subr.bf16.mxu0 %v4431_v9  ;;  %3512 = vmatprep.subr.bf16.mxu1 %v4435_v13 }
 0x273   :  { %3482 = vmatpush1.bf16.msra.mxu0 %v4442_v16  ;;  %3514 = vmatpush1.bf16.msra.mxu1 %v4446_v18 }
 0x274   :  { %3516 = vmatprep.subr.bf16.mxu0 %v4305_v29  ;;  %3548 = vmatprep.subr.bf16.mxu1 %v4307_v30 }
 0x329   :  { %v891_v22 = vpop.f32.mrb[4].mxu0  ;;  %v962_v33 = vpop.f32.mrb[4].mxu1 }
 0x32a   :  { %v3855_v34 = vadd.f32 %v891_v22, %v4498_v26  ;;  %v893_v37 = vpop.f32.mrb[5].mxu0  ;;  %v964_v39 = vpop.f32.mrb[5].mxu1  ;;  %v3871_v52 = vadd.f32 %v962_v33, %v4507_v55 }
 0x32b   :  { %v3856_v41 = vadd.f32 %v893_v37, %v4500_v28  ;;  %v3872_v46 = vadd.f32 %v964_v39, %v4504_v48 }
 0x32c   :  { %v2988_v43 = vmul.f32 -1.442695, %v3855_v34 }
 0x32d   :  { %v2989_v44 = vmul.f32 -1.442695, %v3856_v41  ;;  %v2990_v51 = vmul.f32 -1.442695, %v3872_v46 }
 0x32e   :  { %3957 = vpow2.f32 %v2988_v43 }
 0x32f   :  { %3959 = vpow2.f32 %v2989_v44 }
 0x330   :  { %3961 = vpow2.f32 %v2990_v51 }
 0x331   :  { %3963 = vtanh.f32 %v3871_v52 }
 0x338   :  { %v3958_v56 = vpop.eup %3957 }
 0x339   :  { %v3960_v59 = vpop.eup %3959  ;;  %v974_v61 = vadd.f32 1.0, %v3958_v56 }
 0x33a   :  { %v980_v62 = vadd.f32 1.0, %v3960_v59  ;;  %v3962_v2 = vpop.eup %3961 }
 0x33b   :  { %3965 = vrcp.f32 %v974_v61  ;;  %v3964_v3 = vpop.eup %3963  ;;  %v987_v12 = vadd.f32 1.0, %v3962_v2 }
 0x33c   :  { %3967 = vrcp.f32 %v980_v62 }
 0x33d   :  { %3969 = vrcp.f32 %v987_v12 }
 0x345   :  { %v3966_v6 = vpop.eup %3965 }
 0x346   :  { %v3968_v8 = vpop.eup %3967  ;;  %v991_v11 = vmul.f32 %v3966_v6, %v3964_v3 }
 0x347   :  { %v990_v15 = vmul.f32 %v3968_v8, %v4552_v21  ;;  %v3970_v24 = vpop.eup %3969 }
 0x349   :  { %v4594_v19 = vadd.f32 %v991_v11, %v990_v15 }
 0x34b   :  { %3971 = vtanh.f32 %v4594_v19 }
 0x355   :  { %v3972_v25 = vpop.eup %3971 }
 0x356   :  { %v994_v31 = vmul.f32 %v3972_v25, %v3970_v24 }
 0x358   :  { %1067 = vmatmul.mubr.f32.vlgmr.msra.gmra.mrb[6].mxu0 %v994_v31  ;;  %1138 = vmatmul.mubr.f32.vlgmr.msra.gmra.mrb[6].mxu1 %v994_v31 }
 0x359   :  { %3518 = vmatpush1.bf16.msra.mxu0 %v4312_v35  ;;  %3550 = vmatpush1.bf16.msra.mxu1 %v4315_v38 }
 0x35a   :  { %3520 = vmatprep.subr.bf16.mxu0 %v4318_v42  ;;  %3552 = vmatprep.subr.bf16.mxu1 %v4324_v47 }
 0x35b   :  { %1243 = vmatprep.mubr.f32.mxu0 %v4171_v0  ;;  %1314 = vmatprep.mubr.f32.mxu1 %v4171_v0 }
 0x35d   :  { %3522 = vmatpush1.bf16.msra.mxu0 %v4328_v50  ;;  %3554 = vmatpush1.bf16.msra.mxu1 %v4332_v54 }
 0x35e   :  { %3524 = vmatprep.subr.bf16.mxu0 %v4336_v57  ;;  %3556 = vmatprep.subr.bf16.mxu1 %v4340_v60 }
 0x361   :  { %3526 = vmatpush1.bf16.msra.mxu0 %v4347_v1  ;;  %3558 = vmatpush1.bf16.msra.mxu1 %v4351_v4 }
 0x362   :  { %3528 = vmatprep.subr.bf16.mxu0 %v4355_v7  ;;  %3560 = vmatprep.subr.bf16.mxu1 %v4359_v10 }
 0x365   :  { %3530 = vmatpush1.bf16.msra.mxu0 %v4366_v14  ;;  %3562 = vmatpush1.bf16.msra.mxu1 %v4370_v17 }
 0x366   :  { %3532 = vmatprep.subr.bf16.mxu0 %v4374_v20  ;;  %3564 = vmatprep.subr.bf16.mxu1 %v4378_v23 }
 0x369   :  { %3534 = vmatpush1.bf16.msra.mxu0 %v4385_v27  ;;  %3566 = vmatpush1.bf16.msra.mxu1 %v4389_v32 }
 0x36a   :  { %3536 = vmatprep.subr.bf16.mxu0 %v4393_v36  ;;  %3568 = vmatprep.subr.bf16.mxu1 %v4397_v40 }
 0x36d   :  { %3538 = vmatpush1.bf16.msra.mxu0 %v4404_v45  ;;  %3570 = vmatpush1.bf16.msra.mxu1 %v4408_v49 }
 0x36e   :  { %3540 = vmatprep.subr.bf16.mxu0 %v4412_v53  ;;  %3572 = vmatprep.subr.bf16.mxu1 %v4416_v58 }
 0x371   :  { %3542 = vmatpush1.bf16.msra.mxu0 %v4423_v63  ;;  %3574 = vmatpush1.bf16.msra.mxu1 %v4427_v5 }
 0x372   :  { %3544 = vmatprep.subr.bf16.mxu0 %v4431_v9  ;;  %3576 = vmatprep.subr.bf16.mxu1 %v4435_v13 }
 0x375   :  { %3546 = vmatpush1.bf16.msra.mxu0 %v4442_v16  ;;  %3578 = vmatpush1.bf16.msra.mxu1 %v4446_v18 }
 0x376   :  { %3580 = vmatprep.subr.bf16.mxu0 %v4305_v29  ;;  %3612 = vmatprep.subr.bf16.mxu1 %v4307_v30 }
 0x42b   :  { %v1068_v21 = vpop.f32.mrb[6].mxu0  ;;  %v1139_v22 = vpop.f32.mrb[6].mxu1 }
 0x42c   :  { %v3857_v33 = vadd.f32 %v1068_v21, %v4498_v26  ;;  %v1070_v34 = vpop.f32.mrb[7].mxu0  ;;  %v1141_v37 = vpop.f32.mrb[7].mxu1  ;;  %v3873_v51 = vadd.f32 %v1139_v22, %v4507_v55 }
 0x42d   :  { %v3858_v39 = vadd.f32 %v1070_v34, %v4500_v28  ;;  %v3874_v44 = vadd.f32 %v1141_v37, %v4504_v48 }
 0x42e   :  { %v2991_v41 = vmul.f32 -1.442695, %v3857_v33 }
 0x42f   :  { %v2992_v43 = vmul.f32 -1.442695, %v3858_v39  ;;  %v2993_v46 = vmul.f32 -1.442695, %v3874_v44 }
 0x430   :  { %3973 = vpow2.f32 %v2991_v41 }
 0x431   :  { %3975 = vpow2.f32 %v2992_v43 }
 0x432   :  { %3977 = vpow2.f32 %v2993_v46 }
 0x433   :  { %3979 = vtanh.f32 %v3873_v51 }
 0x43a   :  { %v3974_v52 = vpop.eup %3973 }
 0x43b   :  { %v3976_v56 = vpop.eup %3975  ;;  %v1151_v59 = vadd.f32 1.0, %v3974_v52 }
 0x43c   :  { %v1157_v61 = vadd.f32 1.0, %v3976_v56  ;;  %v3978_v62 = vpop.eup %3977 }
 0x43d   :  { %3981 = vrcp.f32 %v1151_v59  ;;  %v3980_v2 = vpop.eup %3979  ;;  %v1164_v11 = vadd.f32 1.0, %v3978_v62 }
 0x43e   :  { %3983 = vrcp.f32 %v1157_v61 }
 0x43f   :  { %3985 = vrcp.f32 %v1164_v11 }
 0x447   :  { %v3982_v3 = vpop.eup %3981 }
 0x448   :  { %v3984_v6 = vpop.eup %3983  ;;  %v1168_v8 = vmul.f32 %v3982_v3, %v3980_v2 }
 0x449   :  { %v1167_v12 = vmul.f32 %v3984_v6, %v4594_v19  ;;  %v3986_v24 = vpop.eup %3985 }
 0x44b   :  { %v4636_v15 = vadd.f32 %v1168_v8, %v1167_v12 }
 0x44d   :  { %3987 = vtanh.f32 %v4636_v15 }
 0x457   :  { %v3988_v25 = vpop.eup %3987 }
 0x458   :  { %v1171_v31 = vmul.f32 %v3988_v25, %v3986_v24 }
 0x45a   :  { %1244 = vmatmul.mubr.f32.vlgmr.msra.gmra.mrb[8].mxu0 %v1171_v31  ;;  %1315 = vmatmul.mubr.f32.vlgmr.msra.gmra.mrb[8].mxu1 %v1171_v31 }
 0x45b   :  { %3582 = vmatpush1.bf16.msra.mxu0 %v4312_v35  ;;  %3614 = vmatpush1.bf16.msra.mxu1 %v4315_v38 }
 0x45c   :  { %3584 = vmatprep.subr.bf16.mxu0 %v4318_v42  ;;  %3616 = vmatprep.subr.bf16.mxu1 %v4324_v47 }
 0x45d   :  { %1420 = vmatprep.mubr.f32.mxu0 %v4171_v0  ;;  %1491 = vmatprep.mubr.f32.mxu1 %v4171_v0 }
 0x45f   :  { %3586 = vmatpush1.bf16.msra.mxu0 %v4328_v50  ;;  %3618 = vmatpush1.bf16.msra.mxu1 %v4332_v54 }
 0x460   :  { %3588 = vmatprep.subr.bf16.mxu0 %v4336_v57  ;;  %3620 = vmatprep.subr.bf16.mxu1 %v4340_v60 }
 0x463   :  { %3590 = vmatpush1.bf16.msra.mxu0 %v4347_v1  ;;  %3622 = vmatpush1.bf16.msra.mxu1 %v4351_v4 }
 0x464   :  { %3592 = vmatprep.subr.bf16.mxu0 %v4355_v7  ;;  %3624 = vmatprep.subr.bf16.mxu1 %v4359_v10 }
 0x467   :  { %3594 = vmatpush1.bf16.msra.mxu0 %v4366_v14  ;;  %3626 = vmatpush1.bf16.msra.mxu1 %v4370_v17 }
 0x468   :  { %3596 = vmatprep.subr.bf16.mxu0 %v4374_v20  ;;  %3628 = vmatprep.subr.bf16.mxu1 %v4378_v23 }
 0x46b   :  { %3598 = vmatpush1.bf16.msra.mxu0 %v4385_v27  ;;  %3630 = vmatpush1.bf16.msra.mxu1 %v4389_v32 }
 0x46c   :  { %3600 = vmatprep.subr.bf16.mxu0 %v4393_v36  ;;  %3632 = vmatprep.subr.bf16.mxu1 %v4397_v40 }
 0x46f   :  { %3602 = vmatpush1.bf16.msra.mxu0 %v4404_v45  ;;  %3634 = vmatpush1.bf16.msra.mxu1 %v4408_v49 }
 0x470   :  { %3604 = vmatprep.subr.bf16.mxu0 %v4412_v53  ;;  %3636 = vmatprep.subr.bf16.mxu1 %v4416_v58 }
 0x473   :  { %3606 = vmatpush1.bf16.msra.mxu0 %v4423_v63  ;;  %3638 = vmatpush1.bf16.msra.mxu1 %v4427_v5 }
 0x474   :  { %3608 = vmatprep.subr.bf16.mxu0 %v4431_v9  ;;  %3640 = vmatprep.subr.bf16.mxu1 %v4435_v13 }
 0x477   :  { %3610 = vmatpush1.bf16.msra.mxu0 %v4442_v16  ;;  %3642 = vmatpush1.bf16.msra.mxu1 %v4446_v18 }
 0x478   :  { %3644 = vmatprep.subr.bf16.mxu0 %v4305_v29  ;;  %3676 = vmatprep.subr.bf16.mxu1 %v4307_v30 }
 0x52d   :  { %v1245_v19 = vpop.f32.mrb[8].mxu0  ;;  %v1316_v21 = vpop.f32.mrb[8].mxu1 }
 0x52e   :  { %v3859_v22 = vadd.f32 %v1245_v19, %v4498_v26  ;;  %v1247_v33 = vpop.f32.mrb[9].mxu0  ;;  %v1318_v34 = vpop.f32.mrb[9].mxu1  ;;  %v3875_v46 = vadd.f32 %v1316_v21, %v4507_v55 }
 0x52f   :  { %v3860_v37 = vadd.f32 %v1247_v33, %v4500_v28  ;;  %v3876_v43 = vadd.f32 %v1318_v34, %v4504_v48 }
 0x530   :  { %v2994_v39 = vmul.f32 -1.442695, %v3859_v22 }
 0x531   :  { %v2995_v41 = vmul.f32 -1.442695, %v3860_v37  ;;  %v2996_v44 = vmul.f32 -1.442695, %v3876_v43 }
 0x532   :  { %3989 = vpow2.f32 %v2994_v39 }
 0x533   :  { %3991 = vpow2.f32 %v2995_v41 }
 0x534   :  { %3993 = vpow2.f32 %v2996_v44 }
 0x535   :  { %3995 = vtanh.f32 %v3875_v46 }
 0x53c   :  { %v3990_v51 = vpop.eup %3989 }
 0x53d   :  { %v3992_v52 = vpop.eup %3991  ;;  %v1328_v56 = vadd.f32 1.0, %v3990_v51 }
 0x53e   :  { %v1334_v59 = vadd.f32 1.0, %v3992_v52  ;;  %v3994_v61 = vpop.eup %3993 }
 0x53f   :  { %3997 = vrcp.f32 %v1328_v56  ;;  %v3996_v62 = vpop.eup %3995  ;;  %v1341_v8 = vadd.f32 1.0, %v3994_v61 }
 0x540   :  { %3999 = vrcp.f32 %v1334_v59 }
 0x541   :  { %4001 = vrcp.f32 %v1341_v8 }
 0x549   :  { %v3998_v2 = vpop.eup %3997 }
 0x54a   :  { %v4000_v3 = vpop.eup %3999  ;;  %v1345_v6 = vmul.f32 %v3998_v2, %v3996_v62 }
 0x54b   :  { %v1344_v11 = vmul.f32 %v4000_v3, %v4636_v15  ;;  %v4002_v24 = vpop.eup %4001 }
 0x54d   :  { %v4678_v12 = vadd.f32 %v1345_v6, %v1344_v11 }
 0x54f   :  { %4003 = vtanh.f32 %v4678_v12 }
 0x559   :  { %v4004_v25 = vpop.eup %4003 }
 0x55a   :  { %v1348_v31 = vmul.f32 %v4004_v25, %v4002_v24  ;;  %v1884_v25 = vld [vmem:[#allocation6 + $0x18] sm:$0xff] }
 0x55c   :  { %1421 = vmatmul.mubr.f32.vlgmr.msra.gmra.mrb[10].mxu0 %v1348_v31  ;;  %1492 = vmatmul.mubr.f32.vlgmr.msra.gmra.mrb[10].mxu1 %v1348_v31 }
 0x55d   :  { %3646 = vmatpush1.bf16.msra.mxu0 %v4312_v35  ;;  %3678 = vmatpush1.bf16.msra.mxu1 %v4315_v38 }
 0x55e   :  { %3648 = vmatprep.subr.bf16.mxu0 %v4318_v42  ;;  %3680 = vmatprep.subr.bf16.mxu1 %v4324_v47 }
 0x55f   :  { %1597 = vmatprep.mubr.f32.mxu0 %v4171_v0  ;;  %1668 = vmatprep.mubr.f32.mxu1 %v4171_v0 }
 0x561   :  { %3650 = vmatpush1.bf16.msra.mxu0 %v4328_v50  ;;  %3682 = vmatpush1.bf16.msra.mxu1 %v4332_v54 }
 0x562   :  { %3652 = vmatprep.subr.bf16.mxu0 %v4336_v57  ;;  %3684 = vmatprep.subr.bf16.mxu1 %v4340_v60 }
 0x565   :  { %3654 = vmatpush1.bf16.msra.mxu0 %v4347_v1  ;;  %3686 = vmatpush1.bf16.msra.mxu1 %v4351_v4 }
 0x566   :  { %3656 = vmatprep.subr.bf16.mxu0 %v4355_v7  ;;  %3688 = vmatprep.subr.bf16.mxu1 %v4359_v10 }
 0x569   :  { %3658 = vmatpush1.bf16.msra.mxu0 %v4366_v14  ;;  %3690 = vmatpush1.bf16.msra.mxu1 %v4370_v17 }
 0x56a   :  { %3660 = vmatprep.subr.bf16.mxu0 %v4374_v20  ;;  %3692 = vmatprep.subr.bf16.mxu1 %v4378_v23 }
 0x56d   :  { %3662 = vmatpush1.bf16.msra.mxu0 %v4385_v27  ;;  %3694 = vmatpush1.bf16.msra.mxu1 %v4389_v32 }
 0x56e   :  { %3664 = vmatprep.subr.bf16.mxu0 %v4393_v36  ;;  %3696 = vmatprep.subr.bf16.mxu1 %v4397_v40 }
 0x571   :  { %3666 = vmatpush1.bf16.msra.mxu0 %v4404_v45  ;;  %3698 = vmatpush1.bf16.msra.mxu1 %v4408_v49 }
 0x572   :  { %3668 = vmatprep.subr.bf16.mxu0 %v4412_v53  ;;  %3700 = vmatprep.subr.bf16.mxu1 %v4416_v58 }
 0x575   :  { %3670 = vmatpush1.bf16.msra.mxu0 %v4423_v63  ;;  %3702 = vmatpush1.bf16.msra.mxu1 %v4427_v5 }
 0x576   :  { %3672 = vmatprep.subr.bf16.mxu0 %v4431_v9  ;;  %3704 = vmatprep.subr.bf16.mxu1 %v4435_v13 }
 0x579   :  { %3674 = vmatpush1.bf16.msra.mxu0 %v4442_v16  ;;  %3706 = vmatpush1.bf16.msra.mxu1 %v4446_v18 }
 0x57a   :  { %3708 = vmatprep.subr.bf16.mxu0 %v4305_v29  ;;  %3740 = vmatprep.subr.bf16.mxu1 %v4307_v30 }
 0x62f   :  { %v1422_v15 = vpop.f32.mrb[10].mxu0  ;;  %v1493_v19 = vpop.f32.mrb[10].mxu1 }
 0x630   :  { %v3861_v21 = vadd.f32 %v1422_v15, %v4498_v26  ;;  %v1424_v22 = vpop.f32.mrb[11].mxu0  ;;  %v1495_v33 = vpop.f32.mrb[11].mxu1  ;;  %v3877_v44 = vadd.f32 %v1493_v19, %v4507_v55  ;;  %v1885_v15 = vld [vmem:[#allocation6 + $0x20] sm:$0xff]  ;;  %v1886_v19 = vld [vmem:[#allocation6 + $0x28] sm:$0xff] }
 0x631   :  { %v3862_v34 = vadd.f32 %v1424_v22, %v4500_v28  ;;  %v3878_v41 = vadd.f32 %v1495_v33, %v4504_v48  ;;  %v1887_v22 = vld [vmem:[#allocation6 + $0x30] sm:$0xff]  ;;  %v1888_v33 = vld [vmem:[#allocation6 + $0x38] sm:$0xff] }
 0x632   :  { %v2997_v37 = vmul.f32 -1.442695, %v3861_v21  ;;  %v3778_v21 = vpack.c.bf16 %v1886_v19, %v1885_v15 }
 0x633   :  { %v2998_v39 = vmul.f32 -1.442695, %v3862_v34  ;;  %v2999_v43 = vmul.f32 -1.442695, %v3878_v41  ;;  %v3781_v34 = vpack.c.bf16 %v1888_v33, %v1887_v22 }
 0x634   :  { %4005 = vpow2.f32 %v2997_v37  ;;  %v1889_v37 = vld [vmem:[#allocation6 + $0x40] sm:$0xff] }
 0x635   :  { %4007 = vpow2.f32 %v2998_v39  ;;  %v1890_v39 = vld [vmem:[#allocation6 + $0x48] sm:$0xff] }
 0x636   :  { %4009 = vpow2.f32 %v2999_v43  ;;  %v3784_v41 = vpack.c.bf16 %v1890_v39, %v1889_v37  ;;  %v1891_v43 = vld [vmem:[#allocation6 + $0x50] sm:$0xff] }
 0x637   :  { %4011 = vtanh.f32 %v3877_v44  ;;  %v1892_v44 = vld [vmem:[#allocation6 + $0x58] sm:$0xff] }
 0x63e   :  { %v4006_v29 = vpop.eup %4005 }
 0x63f   :  { %v4008_v46 = vpop.eup %4007  ;;  %v1505_v30 = vadd.f32 1.0, %v4006_v29  ;;  %v1893_v29 = vld [vmem:[#allocation6 + $0x60] sm:$0xff] }
 0x640   :  { %v1511_v51 = vadd.f32 1.0, %v4008_v46  ;;  %v4010_v52 = vpop.eup %4009  ;;  %v3787_v46 = vpack.c.bf16 %v1892_v44, %v1891_v43 }
 0x641   :  { %4013 = vrcp.f32 %v1505_v30  ;;  %v4012_v56 = vpop.eup %4011  ;;  %v1518_v2 = vadd.f32 1.0, %v4010_v52  ;;  %v1894_v30 = vld [vmem:[#allocation6 + $0x68] sm:$0xff] }
 0x642   :  { %4015 = vrcp.f32 %v1511_v51  ;;  %v126_v51 = vld [vmem:[%s4980_s5] sm:$0xff]  ;;  %v127_v52 = vld [vmem:[%s4980_s5 + $0x8] sm:$0xff] }
 0x643   :  { %4017 = vrcp.f32 %v1518_v2  ;;  %v1895_v2 = vld [vmem:[#allocation6 + $0x70] sm:$0xff] }
 0x64b   :  { %v4014_v59 = vpop.eup %4013 }
 0x64c   :  { %v4016_v61 = vpop.eup %4015  ;;  %v1522_v62 = vmul.f32 %v4014_v59, %v4012_v56  ;;  %v4780_v56 = vpack.c.bf16 %v127_v52, %v126_v51  ;;  %v128_v59 = vld [vmem:[%s4980_s5 + $0x10] sm:$0xff] }
 0x64d   :  { %v1521_v3 = vmul.f32 %v4016_v61, %v4678_v12  ;;  %v4018_v8 = vpop.eup %4017  ;;  %v1883_v12 = vld [vmem:[#allocation6 + $0x10] sm:$0xff]  ;;  %v3790_v61 = vpack.c.bf16 %v1894_v30, %v1893_v29 }
 0x64e   :  { %v3775_v31 = vpack.c.bf16 %v1884_v25, %v1883_v12 }
 0x64f   :  { %v4720_v6 = vadd.f32 %v1522_v62, %v1521_v3  ;;  %v129_v62 = vld [vmem:[%s4980_s5 + $0x18] sm:$0xff] }
 0x650   :  { %v1896_v3 = vld [vmem:[#allocation6 + $0x78] sm:$0xff] }
 0x651   :  { %4019 = vtanh.f32 %v4720_v6 }
 0x65b   :  { %v4020_v11 = vpop.eup %4019 }
 0x65c   :  { %v1525_v24 = vmul.f32 %v4020_v11, %v4018_v8  ;;  %v3793_v8 = vpack.c.bf16 %v1896_v3, %v1895_v2 }
 0x65e   :  { %1598 = vmatmul.mubr.f32.vlgmr.msra.gmra.mrb[12].mxu0 %v1525_v24  ;;  %1669 = vmatmul.mubr.f32.vlgmr.msra.gmra.mrb[12].mxu1 %v1525_v24 }
 0x65f   :  { %3710 = vmatpush1.bf16.msra.mxu0 %v4312_v35  ;;  %3742 = vmatpush1.bf16.msra.mxu1 %v4315_v38 }
 0x660   :  { %3712 = vmatprep.subr.bf16.mxu0 %v4318_v42  ;;  %3744 = vmatprep.subr.bf16.mxu1 %v4324_v47 }
 0x661   :  { %1774 = vmatprep.mubr.f32.mxu0 %v4171_v0  ;;  %1845 = vmatprep.mubr.f32.mxu1 %v4171_v0 }
 0x663   :  { %3714 = vmatpush1.bf16.msra.mxu0 %v4328_v50  ;;  %3746 = vmatpush1.bf16.msra.mxu1 %v4332_v54 }
 0x664   :  { %3716 = vmatprep.subr.bf16.mxu0 %v4336_v57  ;;  %3748 = vmatprep.subr.bf16.mxu1 %v4340_v60 }
 0x667   :  { %3718 = vmatpush1.bf16.msra.mxu0 %v4347_v1  ;;  %3750 = vmatpush1.bf16.msra.mxu1 %v4351_v4 }
 0x668   :  { %3720 = vmatprep.subr.bf16.mxu0 %v4355_v7  ;;  %3752 = vmatprep.subr.bf16.mxu1 %v4359_v10 }
 0x66b   :  { %3722 = vmatpush1.bf16.msra.mxu0 %v4366_v14  ;;  %3754 = vmatpush1.bf16.msra.mxu1 %v4370_v17 }
 0x66c   :  { %3724 = vmatprep.subr.bf16.mxu0 %v4374_v20  ;;  %3756 = vmatprep.subr.bf16.mxu1 %v4378_v23 }
 0x66f   :  { %3726 = vmatpush1.bf16.msra.mxu0 %v4385_v27  ;;  %3758 = vmatpush1.bf16.msra.mxu1 %v4389_v32 }
 0x670   :  { %3728 = vmatprep.subr.bf16.mxu0 %v4393_v36  ;;  %3760 = vmatprep.subr.bf16.mxu1 %v4397_v40 }
 0x673   :  { %3730 = vmatpush1.bf16.msra.mxu0 %v4404_v45  ;;  %3762 = vmatpush1.bf16.msra.mxu1 %v4408_v49 }
 0x674   :  { %3732 = vmatprep.subr.bf16.mxu0 %v4412_v53  ;;  %3764 = vmatprep.subr.bf16.mxu1 %v4416_v58 }
 0x677   :  { %3734 = vmatpush1.bf16.msra.mxu0 %v4423_v63  ;;  %3766 = vmatpush1.bf16.msra.mxu1 %v4427_v5 }
 0x678   :  { %3736 = vmatprep.subr.bf16.mxu0 %v4431_v9  ;;  %3768 = vmatprep.subr.bf16.mxu1 %v4435_v13  ;;  %v1881_v9 = vld [vmem:[#allocation6] sm:$0xff]  ;;  %v1882_v13 = vld [vmem:[#allocation6 + $0x8] sm:$0xff] }
 0x67b   :  { %3738 = vmatpush1.bf16.msra.mxu0 %v4442_v16  ;;  %3770 = vmatpush1.bf16.msra.mxu1 %v4446_v18  ;;  %v3772_v16 = vpack.c.bf16 %v1882_v13, %v1881_v9  ;;  %v4172_v18 = vmov 0.0|0.0  }
 0x67c   :  { %3771 = vmatprep.subr.bf16.mxu0 %v4172_v18  ;;  %3795 = vmatprep.subr.bf16.mxu1 %v4172_v18 }
 0x731   :  { %v1599_v35 = vpop.f32.mrb[12].mxu0  ;;  %v1670_v38 = vpop.f32.mrb[12].mxu1 }
 0x732   :  { %v3863_v42 = vadd.f32 %v1599_v35, %v4498_v26  ;;  %v1601_v47 = vpop.f32.mrb[13].mxu0  ;;  %v1672_v50 = vpop.f32.mrb[13].mxu1  ;;  %v3879_v7 = vadd.f32 %v1670_v38, %v4507_v55 }
 0x733   :  { %v3864_v54 = vadd.f32 %v1601_v47, %v4500_v28  ;;  %v3880_v1 = vadd.f32 %v1672_v50, %v4504_v48 }
 0x734   :  { %v3000_v57 = vmul.f32 -1.442695, %v3863_v42 }
 0x735   :  { %v3001_v60 = vmul.f32 -1.442695, %v3864_v54  ;;  %v3002_v4 = vmul.f32 -1.442695, %v3880_v1 }
 0x736   :  { %4021 = vpow2.f32 %v3000_v57 }
 0x737   :  { %4023 = vpow2.f32 %v3001_v60 }
 0x738   :  { %4025 = vpow2.f32 %v3002_v4 }
 0x739   :  { %4027 = vtanh.f32 %v3879_v7 }
 0x740   :  { %v4022_v10 = vpop.eup %4021 }
 0x741   :  { %v4024_v14 = vpop.eup %4023  ;;  %v1682_v17 = vadd.f32 1.0, %v4022_v10 }
 0x742   :  { %v1688_v20 = vadd.f32 1.0, %v4024_v14  ;;  %v4026_v23 = vpop.eup %4025 }
 0x743   :  { %4029 = vrcp.f32 %v1682_v17  ;;  %v4028_v27 = vpop.eup %4027  ;;  %v1695_v45 = vadd.f32 1.0, %v4026_v23 }
 0x744   :  { %4031 = vrcp.f32 %v1688_v20 }
 0x745   :  { %4033 = vrcp.f32 %v1695_v45 }
 0x74d   :  { %v4030_v32 = vpop.eup %4029 }
 0x74e   :  { %v4032_v36 = vpop.eup %4031  ;;  %v1699_v40 = vmul.f32 %v4030_v32, %v4028_v27 }
 0x74f   :  { %v1698_v49 = vmul.f32 %v4032_v36, %v4720_v6  ;;  %v4034_v58 = vpop.eup %4033  ;;  %v4790_v6 = vpack.c.bf16 %v129_v62, %v128_v59 }
 0x751   :  { %v4760_v53 = vadd.f32 %v1699_v40, %v1698_v49 }
 0x753   :  { %4035 = vtanh.f32 %v4760_v53 }
 0x75d   :  { %v4036_v63 = vpop.eup %4035 }
 0x75e   :  { %v1702_v5 = vmul.f32 %v4036_v63, %v4034_v58 }
 0x760   :  { %1775 = vmatmul.mubr.f32.vlgmr.msra.gmra.mrb[14].mxu0 %v1702_v5  ;;  %1846 = vmatmul.mubr.f32.vlgmr.msra.gmra.mrb[14].mxu1 %v1702_v5 }
 0x761   :  { %3773 = vmatpush3.bf16.msra.mxu0 %v3772_v16  ;;  %3132 = vmatprep.mubr.msk.f32.mxu0 %vm4173_vm1, %v4171_v0 }
 0x762   :  { %3774 = vmatprep.subr.bf16.mxu0 %v4172_v18  ;;  %3143 = vmatprep.mubr.msk.f32.mxu1 %vm4173_vm1, %v4171_v0 }
 0x763   :  { %3797 = vmatpush3.bf16.msra.mxu1 %v4780_v56 }
 0x764   :  { %3798 = vmatprep.subr.bf16.mxu1 %v4172_v18 }
 0x765   :  { %3776 = vmatpush3.bf16.msra.mxu0 %v3775_v31 }
 0x766   :  { %3777 = vmatprep.subr.bf16.mxu0 %v4172_v18 }
 0x767   :  { %3800 = vmatpush3.bf16.msra.mxu1 %v4790_v6 }
 0x768   :  { %3801 = vmatprep.subr.bf16.mxu1 %v4172_v18 }
 0x769   :  { %3779 = vmatpush3.bf16.msra.mxu0 %v3778_v21 }
 0x76a   :  { %3780 = vmatprep.subr.bf16.mxu0 %v4172_v18  ;;  %3144 = vmatmul.mubr.f32.vlgmr.msra.gmra.mrb[16].mxu1 %v4171_v0 }
 0x76b   :  { %3803 = vmatpush3.bf16.msra.mxu1 %v4780_v56  ;;  %3154 = vmatprep.mubr.msk.f32.mxu1 %vm4173_vm1, %v4171_v0 }
 0x76c   :  { %3804 = vmatprep.subr.bf16.mxu1 %v4172_v18 }
 0x76d   :  { %3782 = vmatpush3.bf16.msra.mxu0 %v3781_v34 }
 0x76e   :  { %3783 = vmatprep.subr.bf16.mxu0 %v4172_v18 }
 0x76f   :  { %3806 = vmatpush3.bf16.msra.mxu1 %v4790_v6 }
 0x770   :  { %3807 = vmatprep.subr.bf16.mxu1 %v4172_v18 }
 0x771   :  { %3785 = vmatpush3.bf16.msra.mxu0 %v3784_v41 }
 0x772   :  { %3786 = vmatprep.subr.bf16.mxu0 %v4172_v18 }
 0x775   :  { %3788 = vmatpush3.bf16.msra.mxu0 %v3787_v46 }
 0x776   :  { %3789 = vmatprep.subr.bf16.mxu0 %v4172_v18 }
 0x779   :  { %3791 = vmatpush3.bf16.msra.mxu0 %v3790_v61 }
 0x77a   :  { %3792 = vmatprep.subr.bf16.mxu0 %v4172_v18 }
 0x77d   :  { %3794 = vmatpush3.bf16.msra.mxu0 %v3793_v8 }
 0x77e   :  { %3831 = vmatprep.subr.bf16.mxu0 %v4172_v18 }
 0x833   :  { %v1776_v11 = vpop.f32.mrb[14].mxu0  ;;  %v1847_v24 = vpop.f32.mrb[14].mxu1 }
 0x834   :  { %v3865_v35 = vadd.f32 %v1776_v11, %v4498_v26  ;;  %v1778_v38 = vpop.f32.mrb[15].mxu0  ;;  %v1849_v42 = vpop.f32.mrb[15].mxu1  ;;  %v3881_v1 = vadd.f32 %v1847_v24, %v4507_v55 }
 0x835   :  { %v3866_v47 = vadd.f32 %v1778_v38, %v4500_v28  ;;  %v3882_v57 = vadd.f32 %v1849_v42, %v4504_v48 }
 0x836   :  { %v3003_v50 = vmul.f32 -1.442695, %v3865_v35 }
 0x837   :  { %v3004_v54 = vmul.f32 -1.442695, %v3866_v47  ;;  %v3005_v60 = vmul.f32 -1.442695, %v3882_v57 }
 0x838   :  { %4037 = vpow2.f32 %v3003_v50 }
 0x839   :  { %4039 = vpow2.f32 %v3004_v54 }
 0x83a   :  { %4041 = vpow2.f32 %v3005_v60 }
 0x83b   :  { %4043 = vtanh.f32 %v3881_v1 }
 0x83d   :  { %v2043_v45 = vpop.f32.mrb[16].mxu1 }
 0x83e   :  { %v3145_v49 = vpop.f32.mrb[17].mxu1 }
 0x842   :  { %v4038_v4 = vpop.eup %4037 }
 0x843   :  { %v4040_v7 = vpop.eup %4039  ;;  %v1859_v10 = vadd.f32 1.0, %v4038_v4 }
 0x844   :  { %v1865_v14 = vadd.f32 1.0, %v4040_v7  ;;  %v4042_v26 = vpop.eup %4041 }
 0x845   :  { %4045 = vrcp.f32 %v1859_v10  ;;  %v4044_v17 = vpop.eup %4043  ;;  %v1872_v27 = vadd.f32 1.0, %v4042_v26 }
 0x846   :  { %4047 = vrcp.f32 %v1865_v14 }
 0x847   :  { %4049 = vrcp.f32 %v1872_v27 }
 0x84f   :  { %v4046_v28 = vpop.eup %4045 }
 0x850   :  { %v4048_v20 = vpop.eup %4047  ;;  %v1876_v23 = vmul.f32 %v4046_v28, %v4044_v17 }
 0x851   :  { %v1875_v32 = vmul.f32 %v4048_v20, %v4760_v53  ;;  %v4050_v55 = vpop.eup %4049  ;;  %v3006_v53 = vld [vmem:[%s4981_s6] ss:$0 sm:$0xff] }
 0x853   :  { %v1877_v48 = vadd.f32 %v1876_v23, %v1875_v32 }
 0x855   :  { %4051 = vtanh.f32 %v1877_v48 }
 0x85f   :  { %v4052_v36 = vpop.eup %4051 }
 0x860   :  { %v1879_v40 = vmul.f32 %v4052_v36, %v4050_v55 }
 0x862   :  { %1880 = vst [vmem:[%s4985_s10] sm:$0xff] %v1879_v40  ;;  %3133 = vmatmul.mubr.f32.vlgmr.msra.gmra.mrb[16].mxu0 %v1879_v40  ;;  %s4174_s10 = smov 64  }
 0x863   :  { %3833 = vmatpush3.bf16.msra.mxu0 %v4780_v56  ;;  %3209 = vmatprep.mubr.msk.f32.mxu0 %vm4173_vm1, %v4171_v0 }
 0x864   :  { %3834 = vmatprep.subr.bf16.mxu0 %v4172_v18 }
 0x867   :  { %3836 = vmatpush3.bf16.msra.mxu0 %v4790_v6 }
 0x935   :  { %v1970_v58 = vpop.f32.mrb[16].mxu0 }
 0x936   :  { %v4820_v63 = vadd.f32 %v3006_v53, %v1970_v58  ;;  %v3134_v5 = vpop.f32.mrb[17].mxu0 }
 0x938   :  { %v2047_v9 = vadd.f32 %v2043_v45, %v4820_v63 }
 0x93a   :  { %4053 = vtanh.f32 %v2047_v9  ;;  %v3007_v16 = vmul.f32 -1.442695, %v2047_v9 }
 0x93c   :  { %4055 = vpow2.f32 %v3007_v16 }
 0x944   :  { %v4054_v13 = vpop.eup %4053 }
 0x945   :  { %2057 = vrot.lane.b32.xlu0 %v4054_v13, %s4174_s10 }
 0x946   :  { %v4056_v12 = vpop.eup %4055 }
 0x947   :  { %v2051_v25 = vadd.f32 1.0, %v4056_v12 }
 0x949   :  { %4057 = vrcp.f32 %v2051_v25 }
 0x953   :  { %v4058_v31 = vpop.eup %4057 }
 0x954   :  { %v2055_v21 = vmul.f32 0.0, %v4058_v31 }
 0x9b7   :  { %v2058_v15 = vpop.permute.xlu0 %2057 }
 0x9b8   :  { %v2060_v19 = vmul.f32 %v4058_v31, %v2058_v15 }
 0x9ba   :  { %2062 = vrot.lane.b32.xlu0 %v2060_v19, %s4167_s24 }
 0xa2c   :  { %v2063_v22 = vpop.permute.xlu0 %2062 }
 0xa2d   :  { %v2065_v33 = vadd.f32 %v2063_v22, %v2055_v21 }
 0xa2f   :  { %4059 = vtanh.f32 %v2065_v33 }
 0xa39   :  { %v4060_v34 = vpop.eup %4059 }
 0xa3a   :  { %2068 = vrot.lane.b32.xlu1 %v4060_v34, %s4174_s10 }
 0xaac   :  { %v2069_v37 = vpop.permute.xlu1 %2068 }
 0xaad   :  { %v2071_v39 = vmul.f32 %v4058_v31, %v2069_v37 }
 0xaaf   :  { %2073 = vrot.lane.b32.xlu1 %v2071_v39, %s4167_s24 }
 0xb21   :  { %v2074_v41 = vpop.permute.xlu1 %2073 }
 0xb22   :  { %2076 = vst.msk [vmem:[#allocation3] sm:$0xff] %vm181_vm0, %v2074_v41  ;;  %3155 = vmatmul.mubr.msk.f32.vlgmr.msra.gmra.mrb[18].mxu1 %vm181_vm0, %v2074_v41 }
 0xb23   :  { %3809 = vmatpush3.bf16.msra.mxu1 %v4780_v56  ;;  %3165 = vmatprep.mubr.msk.f32.mxu1 %vm4173_vm1, %v4171_v0 }
 0xb24   :  { %3810 = vmatprep.subr.bf16.mxu1 %v4172_v18 }
 0xb27   :  { %3812 = vmatpush3.bf16.msra.mxu1 %v4790_v6 }
 0xb28   :  { %3813 = vmatprep.subr.bf16.mxu1 %v4172_v18 }
 0xbf5   :  { %v2145_v43 = vpop.f32.mrb[18].mxu1 }
 0xbf6   :  { %v2149_v44 = vadd.f32 %v2145_v43, %v4820_v63  ;;  %v3156_v29 = vpop.f32.mrb[19].mxu1 }
 0xbf8   :  { %4061 = vtanh.f32 %v2149_v44  ;;  %v3009_v30 = vmul.f32 -1.442695, %v2149_v44 }
 0xbfa   :  { %4063 = vpow2.f32 %v3009_v30 }
 0xc02   :  { %v4062_v46 = vpop.eup %4061 }
 0xc03   :  { %2159 = vrot.lane.b32.xlu0 %v4062_v46, %s4174_s10 }
 0xc04   :  { %v4064_v51 = vpop.eup %4063 }
 0xc05   :  { %v2153_v52 = vadd.f32 1.0, %v4064_v51 }
 0xc07   :  { %4065 = vrcp.f32 %v2153_v52 }
 0xc11   :  { %v4066_v59 = vpop.eup %4065 }
 0xc12   :  { %v2157_v2 = vmul.f32 %v4066_v59, %v2065_v33 }
 0xc75   :  { %v2160_v61 = vpop.permute.xlu0 %2159 }
 0xc76   :  { %v2162_v62 = vmul.f32 %v4066_v59, %v2160_v61 }
 0xc78   :  { %2164 = vrot.lane.b32.xlu1 %v2162_v62, %s4167_s24 }
 0xcea   :  { %v2165_v3 = vpop.permute.xlu1 %2164 }
 0xceb   :  { %v2167_v8 = vadd.f32 %v2165_v3, %v2157_v2 }
 0xced   :  { %4067 = vtanh.f32 %v2167_v8 }
 0xcf7   :  { %v4068_v11 = vpop.eup %4067 }
 0xcf8   :  { %2170 = vrot.lane.b32.xlu0 %v4068_v11, %s4174_s10 }
 0xd6a   :  { %v2171_v24 = vpop.permute.xlu0 %2170 }
 0xd6b   :  { %v2173_v35 = vmul.f32 %v4066_v59, %v2171_v24 }
 0xd6d   :  { %2175 = vrot.lane.b32.xlu1 %v2173_v35, %s4167_s24 }
 0xddf   :  { %v2176_v38 = vpop.permute.xlu1 %2175 }
 0xde0   :  { %2179 = vst.msk [vmem:[#allocation3 + $0x8] sm:$0xff] %vm181_vm0, %v2176_v38  ;;  %3166 = vmatmul.mubr.msk.f32.vlgmr.msra.gmra.mrb[20].mxu1 %vm181_vm0, %v2176_v38 }
 0xde1   :  { %3815 = vmatpush3.bf16.msra.mxu1 %v4780_v56  ;;  %3176 = vmatprep.mubr.msk.f32.mxu1 %vm4173_vm1, %v4171_v0 }
 0xde2   :  { %3816 = vmatprep.subr.bf16.mxu1 %v4172_v18 }
 0xde5   :  { %3818 = vmatpush3.bf16.msra.mxu1 %v4790_v6 }
 0xde6   :  { %3819 = vmatprep.subr.bf16.mxu1 %v4172_v18 }
 0xeb3   :  { %v2248_v42 = vpop.f32.mrb[20].mxu1 }
 0xeb4   :  { %v2252_v47 = vadd.f32 %v2248_v42, %v4820_v63  ;;  %v3167_v50 = vpop.f32.mrb[21].mxu1 }
 0xeb5   :  { %v131_v50 = vld [vmem:[%s4982_s7 + $0x8] sm:$0xff] }
 0xeb6   :  { %4069 = vtanh.f32 %v2252_v47  ;;  %v3011_v57 = vmul.f32 -1.442695, %v2252_v47  ;;  %v130_v47 = vld [vmem:[%s4982_s7] sm:$0xff] }
 0xeb8   :  { %4071 = vpow2.f32 %v3011_v57 }
 0xec0   :  { %v4070_v54 = vpop.eup %4069 }
 0xec1   :  { %2262 = vrot.lane.b32.xlu0 %v4070_v54, %s4174_s10  ;;  %v3843_v54 = vpack.c.bf16 %v131_v50, %v130_v47 }
 0xec2   :  { %v4072_v60 = vpop.eup %4071 }
 0xec3   :  { %v2256_v1 = vadd.f32 1.0, %v4072_v60  ;;  %3844 = vmatprep.subr.bf16.mxu0 %v3843_v54 }
 0xec5   :  { %4073 = vrcp.f32 %v2256_v1 }
 0xecf   :  { %v4074_v4 = vpop.eup %4073 }
 0xed0   :  { %v2260_v14 = vmul.f32 %v4074_v4, %v2167_v8 }
 0xf33   :  { %v2263_v7 = vpop.permute.xlu0 %2262 }
 0xf34   :  { %v2265_v10 = vmul.f32 %v4074_v4, %v2263_v7  ;;  %v133_v7 = vld [vmem:[%s4982_s7 + $0x18] sm:$0xff] }
 0xf36   :  { %2267 = vrot.lane.b32.xlu1 %v2265_v10, %s4167_s24 }
 0xfa8   :  { %v2268_v26 = vpop.permute.xlu1 %2267 }
 0xfa9   :  { %v2270_v17 = vadd.f32 %v2268_v26, %v2260_v14  ;;  %v2798_v26 = vld [vmem:[#allocation3] sm:$0xff] }
 0xfab   :  { %4075 = vtanh.f32 %v2270_v17 }
 0xfb5   :  { %v4076_v28 = vpop.eup %4075 }
 0xfb6   :  { %2273 = vrot.lane.b32.xlu0 %v4076_v28, %s4174_s10 }
0x1028   :  { %v2274_v20 = vpop.permute.xlu0 %2273 }
0x1029   :  { %v2276_v23 = vmul.f32 %v4074_v4, %v2274_v20  ;;  %v132_v4 = vld [vmem:[%s4982_s7 + $0x10] sm:$0xff] }
0x102a   :  { %v3847_v10 = vpack.c.bf16 %v133_v7, %v132_v4 }
0x102b   :  { %2278 = vrot.lane.b32.xlu1 %v2276_v23, %s4167_s24 }
0x109d   :  { %v2279_v27 = vpop.permute.xlu1 %2278 }
0x109e   :  { %2282 = vst.msk [vmem:[#allocation3 + $0x10] sm:$0xff] %vm181_vm0, %v2279_v27  ;;  %3177 = vmatmul.mubr.msk.f32.vlgmr.msra.gmra.mrb[22].mxu1 %vm181_vm0, %v2279_v27 }
0x109f   :  { %3821 = vmatpush3.bf16.msra.mxu1 %v4780_v56  ;;  %3187 = vmatprep.mubr.msk.f32.mxu1 %vm4173_vm1, %v4171_v0 }
0x10a0   :  { %3822 = vmatprep.subr.bf16.mxu1 %v4172_v18 }
0x10a3   :  { %3824 = vmatpush3.bf16.msra.mxu1 %v4790_v6 }
0x10a4   :  { %3825 = vmatprep.subr.bf16.mxu1 %v4172_v18 }
0x10a5   :  { %v2800_v28 = vld [vmem:[#allocation3 + $0x10] sm:$0xff] }
0x1171   :  { %v2351_v32 = vpop.f32.mrb[22].mxu1 }
0x1172   :  { %v2355_v48 = vadd.f32 %v2351_v32, %v4820_v63  ;;  %v3178_v55 = vpop.f32.mrb[23].mxu1 }
0x1174   :  { %4077 = vtanh.f32 %v2355_v48  ;;  %v3013_v40 = vmul.f32 -1.442695, %v2355_v48 }
0x1176   :  { %4079 = vpow2.f32 %v3013_v40 }
0x117e   :  { %v4078_v36 = vpop.eup %4077 }
0x117f   :  { %2365 = vrot.lane.b32.xlu0 %v4078_v36, %s4174_s10  ;;  %v4918_v36 = vld [vmem:[%s4983_s8] ss:$0 sm:$0xff] }
0x1180   :  { %v4080_v45 = vpop.eup %4079 }
0x1181   :  { %v2359_v49 = vadd.f32 1.0, %v4080_v45 }
0x1183   :  { %4081 = vrcp.f32 %v2359_v49 }
0x118d   :  { %v4082_v53 = vpop.eup %4081 }
0x118e   :  { %v2363_v9 = vmul.f32 %v4082_v53, %v2270_v17  ;;  %v2799_v17 = vld [vmem:[#allocation3 + $0x8] sm:$0xff] }
0x11f1   :  { %v2366_v58 = vpop.permute.xlu0 %2365 }
0x11f2   :  { %v2368_v5 = vmul.f32 %v4082_v53, %v2366_v58 }
0x11f4   :  { %2370 = vrot.lane.b32.xlu1 %v2368_v5, %s4167_s24 }
0x1266   :  { %v2371_v13 = vpop.permute.xlu1 %2370 }
0x1267   :  { %v2373_v16 = vadd.f32 %v2371_v13, %v2363_v9 }
0x1269   :  { %4083 = vtanh.f32 %v2373_v16 }
0x1273   :  { %v4084_v12 = vpop.eup %4083 }
0x1274   :  { %2376 = vrot.lane.b32.xlu0 %v4084_v12, %s4174_s10 }
0x12e6   :  { %v2377_v25 = vpop.permute.xlu0 %2376 }
0x12e7   :  { %v2379_v31 = vmul.f32 %v4082_v53, %v2377_v25 }
0x12e9   :  { %2381 = vrot.lane.b32.xlu1 %v2379_v31, %s4167_s24 }
0x135b   :  { %v2382_v15 = vpop.permute.xlu1 %2381 }
0x135c   :  { %2385 = vst.msk [vmem:[#allocation3 + $0x18] sm:$0xff] %vm181_vm0, %v2382_v15  ;;  %3188 = vmatmul.mubr.msk.f32.vlgmr.msra.gmra.mrb[24].mxu1 %vm181_vm0, %v2382_v15 }
0x135d   :  { %3827 = vmatpush3.bf16.msra.mxu1 %v4780_v56  ;;  %3198 = vmatprep.mubr.msk.f32.mxu1 %vm4173_vm1, %v4171_v0 }
0x135e   :  { %3828 = vmatprep.subr.bf16.mxu1 %v4172_v18 }
0x1361   :  { %3830 = vmatpush3.bf16.msra.mxu1 %v4790_v6 }
0x1362   :  { %3837 = vmatprep.subr.bf16.mxu1 %v4172_v18 }
0x1363   :  { %v2801_v20 = vld [vmem:[#allocation3 + $0x18] sm:$0xff] }
0x142f   :  { %v2454_v19 = vpop.f32.mrb[24].mxu1 }
0x1430   :  { %v2458_v21 = vadd.f32 %v2454_v19, %v4820_v63  ;;  %v3189_v22 = vpop.f32.mrb[25].mxu1 }
0x1432   :  { %4085 = vtanh.f32 %v2458_v21  ;;  %v3015_v34 = vmul.f32 -1.442695, %v2458_v21 }
0x1434   :  { %4087 = vpow2.f32 %v3015_v34 }
0x143c   :  { %v4086_v33 = vpop.eup %4085 }
0x143d   :  { %2468 = vrot.lane.b32.xlu0 %v4086_v33, %s4174_s10 }
0x143e   :  { %v4088_v37 = vpop.eup %4087 }
0x143f   :  { %v2462_v39 = vadd.f32 1.0, %v4088_v37 }
0x1441   :  { %4089 = vrcp.f32 %v2462_v39 }
0x144b   :  { %v4090_v41 = vpop.eup %4089 }
0x144c   :  { %v2466_v29 = vmul.f32 %v4090_v41, %v2373_v16 }
0x14af   :  { %v2469_v43 = vpop.permute.xlu0 %2468 }
0x14b0   :  { %v2471_v44 = vmul.f32 %v4090_v41, %v2469_v43 }
0x14b2   :  { %2473 = vrot.lane.b32.xlu1 %v2471_v44, %s4167_s24 }
0x1524   :  { %v2474_v46 = vpop.permute.xlu1 %2473 }
0x1525   :  { %v2476_v30 = vadd.f32 %v2474_v46, %v2466_v29 }
0x1527   :  { %4091 = vtanh.f32 %v2476_v30 }
0x1531   :  { %v4092_v51 = vpop.eup %4091 }
0x1532   :  { %2479 = vrot.lane.b32.xlu0 %v4092_v51, %s4174_s10 }
0x15a4   :  { %v2480_v52 = vpop.permute.xlu0 %2479 }
0x15a5   :  { %v2482_v59 = vmul.f32 %v4090_v41, %v2480_v52 }
0x15a7   :  { %2484 = vrot.lane.b32.xlu1 %v2482_v59, %s4167_s24 }
0x1619   :  { %v2485_v61 = vpop.permute.xlu1 %2484 }
0x161a   :  { %2488 = vst.msk [vmem:[#allocation3 + $0x20] sm:$0xff] %vm181_vm0, %v2485_v61  ;;  %3199 = vmatmul.mubr.msk.f32.vlgmr.msra.gmra.mrb[26].mxu1 %vm181_vm0, %v2485_v61 }
0x161b   :  { %3839 = vmatpush3.bf16.msra.mxu1 %v4780_v56  ;;  %3220 = vmatprep.mubr.msk.f32.mxu1 %vm4173_vm1, %v4171_v0 }
0x161c   :  { %3840 = vmatprep.subr.bf16.mxu1 %v4172_v18 }
0x161f   :  { %3842 = vmatpush3.bf16.msra.mxu1 %v4790_v6 }
0x1621   :  { %v2802_v23 = vld [vmem:[#allocation3 + $0x20] sm:$0xff] }
0x16ed   :  { %v2557_v62 = vpop.f32.mrb[26].mxu1 }
0x16ee   :  { %v2561_v2 = vadd.f32 %v2557_v62, %v4820_v63  ;;  %v3200_v3 = vpop.f32.mrb[27].mxu1 }
0x16f0   :  { %4093 = vtanh.f32 %v2561_v2  ;;  %v3017_v11 = vmul.f32 -1.442695, %v2561_v2 }
0x16f2   :  { %4095 = vpow2.f32 %v3017_v11 }
0x16fa   :  { %v4094_v8 = vpop.eup %4093 }
0x16fb   :  { %2571 = vrot.lane.b32.xlu0 %v4094_v8, %s4174_s10 }
0x16fc   :  { %v4096_v24 = vpop.eup %4095 }
0x16fd   :  { %v2565_v35 = vadd.f32 1.0, %v4096_v24 }
0x16ff   :  { %4097 = vrcp.f32 %v2565_v35 }
0x1709   :  { %v4098_v56 = vpop.eup %4097 }
0x170a   :  { %v2569_v18 = vmul.f32 %v4098_v56, %v2476_v30 }
0x176d   :  { %v2572_v38 = vpop.permute.xlu0 %2571 }
0x176e   :  { %v2574_v0 = vmul.f32 %v4098_v56, %v2572_v38 }
0x1770   :  { %2576 = vrot.lane.b32.xlu1 %v2574_v0, %s4167_s24 }
0x17e2   :  { %v2577_v6 = vpop.permute.xlu1 %2576 }
0x17e3   :  { %v4889_v42 = vadd.f32 %v2577_v6, %v2569_v18 }
0x17e5   :  { %4099 = vtanh.f32 %v4889_v42 }
0x17ef   :  { %v4100_v57 = vpop.eup %4099 }
0x17f0   :  { %2582 = vrot.lane.b32.xlu0 %v4100_v57, %s4174_s10 }
0x1862   :  { %v2583_v60 = vpop.permute.xlu0 %2582 }
0x1863   :  { %v2585_v1 = vmul.f32 %v4098_v56, %v2583_v60 }
0x1865   :  { %2587 = vrot.lane.b32.xlu1 %v2585_v1, %s4167_s24 }
0x18d7   :  { %v2588_v14 = vpop.permute.xlu1 %2587 }
0x18d8   :  { %2591 = vst.msk [vmem:[#allocation3 + $0x28] sm:$0xff] %vm181_vm0, %v2588_v14  ;;  %3210 = vmatmul.mubr.msk.f32.vlgmr.msra.gmra.mrb[18].mxu0 %vm181_vm0, %v2588_v14 }
0x18d9   :  { %3846 = vmatpush3.bf16.msra.mxu0 %v3843_v54  ;;  %3231 = vmatprep.mubr.msk.f32.mxu0 %vm181_vm0, %v2798_v26 }
0x18da   :  { %3848 = vmatprep.subr.bf16.mxu0 %v3847_v10 }
0x18dd   :  { %3850 = vmatpush3.bf16.msra.mxu0 %v3847_v10 }
0x18df   :  { %v2803_v27 = vld [vmem:[#allocation3 + $0x28] sm:$0xff] }
0x18e0   :  { %3232 = vmatmul.mubr.msk.f32.vlgmr.msra.gmra.mrb[20].mxu0 %vm181_vm0, %v2799_v17 }
0x18e1   :  { %3234 = vmatprep.mubr.msk.f32.mxu0 %vm181_vm0, %v2800_v28 }
0x18e4   :  { %3235 = vmatmul.mubr.msk.f32.gmra.mrb[22].mxu0 %vm181_vm0, %v2801_v20 }
0x18e5   :  { %3237 = vmatprep.mubr.msk.f32.mxu0 %vm181_vm0, %v2802_v23 }
0x18e8   :  { %3238 = vmatmul.mubr.msk.f32.gmra.mrb[24].mxu0 %vm181_vm0, %v2803_v27 }
0x19ab   :  { %v2660_v32 = vpop.f32.mrb[18].mxu0 }
0x19ac   :  { %v2664_v48 = vadd.f32 %v2660_v32, %v4820_v63  ;;  %v3211_v55 = vpop.f32.mrb[19].mxu0 }
0x19ae   :  { %4101 = vtanh.f32 %v2664_v48  ;;  %v3019_v19 = vmul.f32 -1.442695, %v2664_v48 }
0x19b0   :  { %4103 = vpow2.f32 %v3019_v19 }
0x19b3   :  { %v3233_v40 = vpop.f32.mrb[20].mxu0 }
0x19b4   :  { %v2908_v45 = vadd.f32 %v3233_v40, %v4918_v36  ;;  %v2902_v49 = vpop.f32.mrb[21].mxu0 }
0x19b5   :  { %v2903_v53 = vadd.f32 %v4918_v36, %v2902_v49 }
0x19b6   :  { %2942 = vst.msk [vmem:[%s4984_s9 + $0x8] sm:$0xff] %vm181_vm0, %v2908_v45 }
0x19b7   :  { %2941 = vst.msk [vmem:[%s4984_s9] sm:$0xff] %vm181_vm0, %v2903_v53  ;;  %v3236_v58 = vpop.f32.mrb[22].mxu0 }
0x19b8   :  { %v4102_v5 = vpop.eup %4101  ;;  %v2918_v9 = vadd.f32 %v3236_v58, %v4918_v36  ;;  %v2912_v13 = vpop.f32.mrb[23].mxu0 }
0x19b9   :  { %v2913_v16 = vadd.f32 %v4918_v36, %v2912_v13  ;;  %2674 = vrot.lane.b32.xlu0 %v4102_v5, %s4174_s10 }
0x19ba   :  { %2944 = vst.msk [vmem:[%s4984_s9 + $0x18] sm:$0xff] %vm181_vm0, %v2918_v9  ;;  %v4104_v21 = vpop.eup %4103 }
0x19bb   :  { %2943 = vst.msk [vmem:[%s4984_s9 + $0x10] sm:$0xff] %vm181_vm0, %v2913_v16  ;;  %v3239_v12 = vpop.f32.mrb[24].mxu0  ;;  %v2668_v22 = vadd.f32 1.0, %v4104_v21 }
0x19bc   :  { %v2928_v25 = vadd.f32 %v3239_v12, %v4918_v36  ;;  %v2922_v31 = vpop.f32.mrb[25].mxu0 }
0x19bd   :  { %v2923_v15 = vadd.f32 %v4918_v36, %v2922_v31  ;;  %4105 = vrcp.f32 %v2668_v22 }
0x19be   :  { %2946 = vst.msk [vmem:[%s4984_s9 + $0x28] sm:$0xff] %vm181_vm0, %v2928_v25 }
0x19bf   :  { %2945 = vst.msk [vmem:[%s4984_s9 + $0x20] sm:$0xff] %vm181_vm0, %v2923_v15 }
0x19c7   :  { %v4106_v33 = vpop.eup %4105 }
0x19c8   :  { %v2672_v39 = vmul.f32 %v4106_v33, %v4889_v42 }
0x1a2b   :  { %v2675_v34 = vpop.permute.xlu0 %2674 }
0x1a2c   :  { %v2677_v37 = vmul.f32 %v4106_v33, %v2675_v34 }
0x1a2e   :  { %2679 = vrot.lane.b32.xlu1 %v2677_v37, %s4167_s24 }
0x1aa0   :  { %v2680_v41 = vpop.permute.xlu1 %2679 }
0x1aa1   :  { %v2682_v43 = vadd.f32 %v2680_v41, %v2672_v39 }
0x1aa3   :  { %4107 = vtanh.f32 %v2682_v43 }
0x1aad   :  { %v4108_v44 = vpop.eup %4107 }
0x1aae   :  { %2685 = vrot.lane.b32.xlu0 %v4108_v44, %s4174_s10 }
0x1b20   :  { %v2686_v29 = vpop.permute.xlu0 %2685 }
0x1b21   :  { %v2688_v46 = vmul.f32 %v4106_v33, %v2686_v29 }
0x1b23   :  { %2690 = vrot.lane.b32.xlu1 %v2688_v46, %s4167_s24 }
0x1b95   :  { %v2691_v30 = vpop.permute.xlu1 %2690 }
0x1b96   :  { %2694 = vst.msk [vmem:[#allocation3 + $0x30] sm:$0xff] %vm181_vm0, %v2691_v30  ;;  %3221 = vmatmul.mubr.msk.f32.vlgmr.msra.gmra.mrb[28].mxu1 %vm181_vm0, %v2691_v30 }
0x1b9d   :  { %v2804_v51 = vld [vmem:[#allocation3 + $0x30] sm:$0xff] }
0x1b9e   :  { %3240 = vmatprep.mubr.msk.f32.mxu0 %vm181_vm0, %v2804_v51 }
0x1c69   :  { %v2763_v52 = vpop.f32.mrb[28].mxu1 }
0x1c6a   :  { %v2767_v59 = vadd.f32 %v2763_v52, %v4820_v63  ;;  %v3222_v61 = vpop.f32.mrb[29].mxu1 }
0x1c6c   :  { %4109 = vtanh.f32 %v2767_v59  ;;  %v3021_v2 = vmul.f32 -1.442695, %v2767_v59 }
0x1c6e   :  { %4111 = vpow2.f32 %v3021_v2 }
0x1c76   :  { %v4110_v62 = vpop.eup %4109 }
0x1c77   :  { %2777 = vrot.lane.b32.xlu0 %v4110_v62, %s4174_s10 }
0x1c78   :  { %v4112_v3 = vpop.eup %4111 }
0x1c79   :  { %v2771_v8 = vadd.f32 1.0, %v4112_v3 }
0x1c7b   :  { %4113 = vrcp.f32 %v2771_v8 }
0x1c85   :  { %v4114_v11 = vpop.eup %4113 }
0x1c86   :  { %v2775_v56 = vmul.f32 %v4114_v11, %v2682_v43 }
0x1ce9   :  { %v2778_v24 = vpop.permute.xlu0 %2777 }
0x1cea   :  { %v2780_v35 = vmul.f32 %v4114_v11, %v2778_v24 }
0x1cec   :  { %2782 = vrot.lane.b32.xlu1 %v2780_v35, %s4167_s24 }
0x1d5e   :  { %v2783_v38 = vpop.permute.xlu1 %2782 }
0x1d5f   :  { %v2785_v0 = vadd.f32 %v2783_v38, %v2775_v56 }
0x1d61   :  { %4115 = vtanh.f32 %v2785_v0 }
0x1d6b   :  { %v4116_v63 = vpop.eup %4115 }
0x1d6c   :  { %2788 = vrot.lane.b32.xlu0 %v4116_v63, %s4174_s10 }
0x1dde   :  { %v2789_v18 = vpop.permute.xlu0 %2788 }
0x1ddf   :  { %v2791_v6 = vmul.f32 %v4114_v11, %v2789_v18 }
0x1de1   :  { %2793 = vrot.lane.b32.xlu1 %v2791_v6, %s4167_s24 }
0x1e53   :  { %v2794_v42 = vpop.permute.xlu1 %2793 }
0x1e54   :  { %2797 = vst.msk [vmem:[#allocation3 + $0x38] sm:$0xff] %vm181_vm0, %v2794_v42 }
0x1e5b   :  { %v2805_v47 = vld [vmem:[#allocation3 + $0x38] sm:$0xff] }
0x1e5c   :  { %3241 = vmatmul.mubr.msk.f32.gmra.mrb[26].mxu0 %vm181_vm0, %v2805_v47 }
0x1f2f   :  { %v3242_v50 = vpop.f32.mrb[26].mxu0 }
0x1f30   :  { %v2938_v54 = vadd.f32 %v3242_v50, %v4918_v36  ;;  %v2932_v57 = vpop.f32.mrb[27].mxu0 }
0x1f31   :  { %v2933_v60 = vadd.f32 %v4918_v36, %v2932_v57 }
0x1f32   :  { %2948 = vst.msk [vmem:[%s4984_s9 + $0x38] sm:$0xff] %vm181_vm0, %v2938_v54 }
0x1f33   :  { %2947 = vst.msk [vmem:[%s4984_s9 + $0x30] sm:$0xff] %vm181_vm0, %v2933_v60 }
0x1f34   :  { %2957 = vsyncpa [#allocation5], 1 }
0x1f35   :  { %2958 = vsyncpa [#allocation7], 1 }

</bundles_post_ra>
